<compile_context>
chip_gen: v7x
topology: tpu7x:2x2x1
jax: 0.10.0
libtpu: 0.0.40
codegen_flags: <defaults>
</compile_context>

<pallas_src>
import jax
import jax.numpy as jnp
from jax.experimental import pallas as pl
from jax.experimental.pallas import tpu as pltpu


# ---------------------------------------------------------------------------
# Pallas kernel: fused  silu(x@W1) * (x@W3)  followed by  @W2, tiled over
# (token tiles) x (hidden tiles), f32 accumulator across the hidden axis.
# ---------------------------------------------------------------------------
def _ffn_kernel(x_ref, w13_ref, w2_ref, o_ref, acc_ref):
    # acc init on the first hidden tile of each token tile.
    @pl.when(pl.program_id(1) == 0)
    def _():
        acc_ref[...] = jnp.zeros_like(acc_ref)

    th = w2_ref.shape[0]                               # hidden tile size (static)

    x = x_ref[...]                                     # (tm, dim)   bf16
    w13 = w13_ref[...]                                 # (dim, 2*th) bf16
    w2 = w2_ref[...]                                   # (th, dim)   bf16

    # One wide MXU contraction for both up-projections, f32 accumulation.
    h = jnp.dot(x, w13, preferred_element_type=jnp.float32)   # (tm, 2*th)
    h1 = h[:, :th]                                     # silu branch (128-aligned)
    h3 = h[:, th:]                                     # gate branch

    # SiLU(h1) * h3 in f32.
    gated = h1 * jax.nn.sigmoid(h1) * h3               # (tm, th) f32

    # Down-projection partial sum for this hidden tile.
    acc_ref[...] += jnp.dot(gated.astype(jnp.bfloat16), w2,
                            preferred_element_type=jnp.float32)

    # Write out once, on the last hidden tile.
    @pl.when(pl.program_id(1) == pl.num_programs(1) - 1)
    def _():
        o_ref[...] = acc_ref[...].astype(o_ref.dtype)


def _pick_hidden_tile(hidden, cap=2048):
    """Largest hidden tile <= cap that divides hidden (multiple of 128)."""
    if hidden <= cap:
        return hidden
    for cand in range(cap, 127, -128):
        if hidden % cand == 0:
            return cand
    return hidden


def feed_forward_pallas(x, w13, w2t, hidden, th, *, tm=256):
    """x: (tokens, dim) f32.  w13: (dim, 2*hidden) bf16 (tile-interleaved
    w1^T|w3^T).  w2t: (hidden, dim) bf16."""
    tokens, dim = x.shape
    assert w13.shape == (dim, 2 * hidden)
    assert w2t.shape == (hidden, dim)
    assert hidden % th == 0

    # Token tile: big enough to fill the MXU; for tiny problems one tile.
    tm = min(tm, tokens)
    pad = (-tokens) % tm
    xp = jnp.pad(x, ((0, pad), (0, 0))) if pad else x
    xp = xp.astype(jnp.bfloat16)            # cast once, outside the kernel
    tokens_p = tokens + pad

    grid = (tokens_p // tm, hidden // th)   # reduction (hidden) axis last

    # Size the scoped-VMEM limit from the actual tile footprint (headroom 4x),
    # staying below v7x's 64 MiB physical VMEM.
    bf16 = 2
    f32 = 4
    vmem_need = (2 * tm * dim * bf16           # x tiles (double buffered)
                 + 2 * tm * dim * f32          # out tiles
                 + 2 * dim * (2 * th) * bf16   # w13 tiles
                 + 2 * th * dim * bf16         # w2 tiles
                 + tm * dim * f32)             # f32 accumulator scratch
    vmem_limit = min(48 << 20, max(4 * vmem_need, 16 << 20))

    cost = pl.CostEstimate(
        flops=6 * tokens_p * dim * hidden,          # 2 up-proj + 1 down-proj
        transcendentals=tokens_p * hidden,          # sigmoid
        bytes_accessed=(xp.size * bf16
                        + w13.size * bf16
                        + w2t.size * bf16
                        + tokens_p * dim * f32),
    )

    out = pl.pallas_call(
        _ffn_kernel,
        out_shape=jax.ShapeDtypeStruct((tokens_p, dim), x.dtype),
        grid_spec=pltpu.PrefetchScalarGridSpec(
            num_scalar_prefetch=0,
            grid=grid,
            in_specs=[
                pl.BlockSpec((tm, dim), lambda i, j: (i, 0)),        # x tile
                pl.BlockSpec((dim, 2 * th), lambda i, j: (0, j)),    # w1|w3 tile
                pl.BlockSpec((th, dim), lambda i, j: (j, 0)),        # w2 tile
            ],
            out_specs=pl.BlockSpec((tm, dim), lambda i, j: (i, 0)),
            scratch_shapes=[pltpu.VMEM((tm, dim), jnp.float32)],     # accumulator
        ),
        compiler_params=pltpu.CompilerParams(
            dimension_semantics=("parallel", "arbitrary"),
            vmem_limit_bytes=vmem_limit),
        cost_estimate=cost,
    )(xp, w13, w2t)

    return out[:tokens] if pad else out


# ---------------------------------------------------------------------------
# Module-equivalent wrapper
# ---------------------------------------------------------------------------
def compute_hidden_dim(dim, hidden_dim, multiple_of, ffn_dim_multiplier=None):
    hidden_dim = int(2 * hidden_dim / 3)
    if ffn_dim_multiplier is not None:
        hidden_dim = int(ffn_dim_multiplier * hidden_dim)
    hidden_dim = multiple_of * ((hidden_dim + multiple_of - 1) // multiple_of)
    return hidden_dim


def init_params(key, dim, hidden_dim):
    # Deterministic synthetic init (module passes init_method=lambda x: x,
    # i.e. no prescribed initializer); small random normals.
    k1, k2, k3 = jax.random.split(key, 3)
    # PyTorch nn.Linear stores weight as (out_features, in_features).
    w1 = jax.random.normal(k1, (hidden_dim, dim), jnp.float32) * 0.02
    w2 = jax.random.normal(k2, (dim, hidden_dim), jnp.float32) * 0.02
    w3 = jax.random.normal(k3, (hidden_dim, dim), jnp.float32) * 0.02
    return w1, w2, w3


def pack_weights(w1, w2, w3, th):
    """Pack PyTorch-layout (out,in) weights for the kernel.

    Returns w13 (dim, 2*hidden) bf16 with per-tile interleaving
    [w1_tile_j | w3_tile_j], and w2t (hidden, dim) bf16.
    """
    hidden, d = w1.shape
    assert hidden % th == 0
    nh = hidden // th
    w1t = w1.T.astype(jnp.bfloat16)          # (dim, hidden)
    w3t = w3.T.astype(jnp.bfloat16)          # (dim, hidden)
    w13 = jnp.concatenate(
        [w1t.reshape(d, nh, th), w3t.reshape(d, nh, th)], axis=2
    ).reshape(d, 2 * hidden)
    w2t = w2.T.astype(jnp.bfloat16)          # (hidden, dim)
    return w13, w2t


def feed_forward(x_bsd, w1, w2, w3, *, tm=256, th=None):
    """x_bsd: (batch, seq, dim) float32 -> (batch, seq, dim)."""
    b, s, d = x_bsd.shape
    hidden = w1.shape[0]
    if th is None:
        th = _pick_hidden_tile(hidden)
    assert hidden % th == 0

    w13, w2t = pack_weights(w1, w2, w3, th)
    x2 = x_bsd.reshape(b * s, d)
    out2 = feed_forward_pallas(x2, w13, w2t, hidden, th, tm=tm)
    return out2.reshape(b, s, d)


def feed_forward_ref(x_bsd, w1, w2, w3):
    h = jax.nn.silu(x_bsd @ w1.T) * (x_bsd @ w3.T)
    return h @ w2.T


if __name__ == "__main__":
    # Module hyper-params (small, but MXU/tile friendly: hidden rounds to 512).
    dim = 128
    base_hidden = 4 * dim                       # 512
    multiple_of = 256
    ffn_dim_multiplier = None
    hidden_dim = compute_hidden_dim(dim, base_hidden, multiple_of,
                                    ffn_dim_multiplier)   # -> 512

    batch, seq = 2, 128                          # 256 tokens

    key = jax.random.PRNGKey(0)
    kx, kp = jax.random.split(key)
    x = jax.random.normal(kx, (batch, seq, dim), jnp.float32)
    w1, w2, w3 = init_params(kp, dim, hidden_dim)

    # tm=128, th=256 -> grid=(2, 2): exercises both the parallel token axis
    # and the hidden-reduction accumulator path.
    out = feed_forward(x, w1, w2, w3, tm=128, th=256)
    out = jax.block_until_ready(out)

    ref = feed_forward_ref(x, w1, w2, w3)
    assert out.shape == (batch, seq, dim)
    # bf16 MXU inputs with f32 accumulation: compare with a relative-error
    # criterion rather than a strict f32 allclose.
    rel_err = float(jnp.max(jnp.abs(out - ref)) / (jnp.max(jnp.abs(ref)) + 1e-12))
    assert rel_err < 3e-2, f"mismatch vs reference: rel_err={rel_err}"

    print("KERNEL_OK")
</pallas_src>

<mosaic_0001>
module attributes {stable_mosaic.version = 11 : i64} {
  func.func @_ffn_kernel(%arg0: i32, %arg1: i32, %arg2: memref<128x128xbf16, #tpu.memory_space<vmem>>, %arg3: memref<128x512xbf16, #tpu.memory_space<vmem>>, %arg4: memref<256x128xbf16, #tpu.memory_space<vmem>>, %arg5: memref<128x128xf32, #tpu.memory_space<vmem>>, %arg6: memref<128x128xf32, #tpu.memory_space<vmem>>) attributes {dimension_semantics = [#tpu.dimension_semantics<parallel>, #tpu.dimension_semantics<arbitrary>], iteration_bounds = array<i64: 2, 2>, scalar_prefetch = 0 : i64, scratch_operands = 1 : i64, tpu.core_type = #tpu.core_type<tc>, window_params = [{transform_indices = @transform_0, window_bounds = array<i64: 128, 128>}, {transform_indices = @transform_1, window_bounds = array<i64: 128, 512>}, {transform_indices = @transform_2, window_bounds = array<i64: 256, 128>}, {transform_indices = @transform_3, window_bounds = array<i64: 128, 128>}]} {
    %c0_i32 = arith.constant 0 : i32
    %0 = arith.cmpi eq, %arg1, %c0_i32 : i32
    %1 = arith.extui %0 : i1 to i32
    %c0_i32_0 = arith.constant 0 : i32
    %2 = arith.cmpi ne, %1, %c0_i32_0 : i32
    scf.if %2 {
      %cst_13 = arith.constant 0.000000e+00 : f32
      %24 = vector.broadcast %cst_13 : f32 to vector<128x128xf32>
      %c0_14 = arith.constant 0 : index
      %c0_15 = arith.constant 0 : index
      %25 = vector.load %arg6[%c0_14, %c0_15] : memref<128x128xf32, #tpu.memory_space<vmem>>, vector<128x128xf32>
      tpu.vector_store %arg6[%c0_14, %c0_15], %24 {strides = array<i32>} : memref<128x128xf32, #tpu.memory_space<vmem>>, vector<128x128xf32>,
    } else {
    }
    %c0 = arith.constant 0 : index
    %c0_1 = arith.constant 0 : index
    %3 = vector.load %arg2[%c0, %c0_1] : memref<128x128xbf16, #tpu.memory_space<vmem>>, vector<128x128xbf16>
    %c0_2 = arith.constant 0 : index
    %c0_3 = arith.constant 0 : index
    %4 = vector.load %arg3[%c0_2, %c0_3] : memref<128x512xbf16, #tpu.memory_space<vmem>>, vector<128x512xbf16>
    %c0_4 = arith.constant 0 : index
    %c0_5 = arith.constant 0 : index
    %5 = vector.load %arg4[%c0_4, %c0_5] : memref<256x128xbf16, #tpu.memory_space<vmem>>, vector<256x128xbf16>
    %cst = arith.constant dense<0.000000e+00> : vector<128x512xf32>
    %6 = tpu.matmul %3, %4, %cst {dimension_numbers = #tpu.dot_dimension_numbers<[1], [0], [0], [1], [0, 0, 1, 1], [], []>} : vector<128x128xbf16>, vector<128x512xbf16>, vector<128x512xf32> -> vector<128x512xf32>
    %7 = vector.extract_strided_slice %6 {offsets = [0, 0], sizes = [128, 256], strides = [1, 1]} : vector<128x512xf32> to vector<128x256xf32>
    %8 = vector.extract_strided_slice %6 {offsets = [0, 256], sizes = [128, 256], strides = [1, 1]} : vector<128x512xf32> to vector<128x256xf32>
    %9 = arith.negf %7 : vector<128x256xf32>
    %10 = math.exp %9 : vector<128x256xf32>
    %cst_6 = arith.constant 1.000000e+00 : f32
    %11 = vector.broadcast %cst_6 : f32 to vector<128x256xf32>
    %12 = arith.addf %11, %10 : vector<128x256xf32>
    %13 = arith.divf %11, %12 : vector<128x256xf32>
    %14 = arith.mulf %7, %13 : vector<128x256xf32>
    %15 = arith.mulf %14, %8 : vector<128x256xf32>
    %c0_7 = arith.constant 0 : index
    %c0_8 = arith.constant 0 : index
    %16 = vector.load %arg6[%c0_7, %c0_8] : memref<128x128xf32, #tpu.memory_space<vmem>>, vector<128x128xf32>
    %17 = arith.truncf %15 : vector<128x256xf32> to vector<128x256xbf16>
    %cst_9 = arith.constant dense<0.000000e+00> : vector<128x128xf32>
    %18 = tpu.matmul %17, %5, %cst_9 {dimension_numbers = #tpu.dot_dimension_numbers<[1], [0], [0], [1], [0, 0, 1, 1], [], []>} : vector<128x256xbf16>, vector<256x128xbf16>, vector<128x128xf32> -> vector<128x128xf32>
    %19 = arith.addf %16, %18 : vector<128x128xf32>
    %c0_10 = arith.constant 0 : index
    %c0_11 = arith.constant 0 : index
    %20 = vector.load %arg6[%c0_10, %c0_11] : memref<128x128xf32, #tpu.memory_space<vmem>>, vector<128x128xf32>
    tpu.vector_store %arg6[%c0_10, %c0_11], %19 {strides = array<i32>} : memref<128x128xf32, #tpu.memory_space<vmem>>, vector<128x128xf32>,
    %c1_i32 = arith.constant 1 : i32
    %21 = arith.cmpi eq, %arg1, %c1_i32 : i32
    %22 = arith.extui %21 : i1 to i32
    %c0_i32_12 = arith.constant 0 : i32
    %23 = arith.cmpi ne, %22, %c0_i32_12 : i32
    scf.if %23 {
      %c0_13 = arith.constant 0 : index
      %c0_14 = arith.constant 0 : index
      %24 = vector.load %arg6[%c0_13, %c0_14] : memref<128x128xf32, #tpu.memory_space<vmem>>, vector<128x128xf32>
      %c0_15 = arith.constant 0 : index
      %c0_16 = arith.constant 0 : index
      %25 = vector.load %arg5[%c0_15, %c0_16] : memref<128x128xf32, #tpu.memory_space<vmem>>, vector<128x128xf32>
      tpu.vector_store %arg5[%c0_15, %c0_16], %24 {strides = array<i32>} : memref<128x128xf32, #tpu.memory_space<vmem>>, vector<128x128xf32>,
    } else {
    }
    return
  }
  func.func @transform_0(%arg0: i32, %arg1: i32) -> (i32, i32) {
    %c0_i32 = arith.constant 0 : i32
    %c0_i32_0 = arith.constant 0 : i32
    return %arg0, %c0_i32 : i32, i32
  }
  func.func @transform_1(%arg0: i32, %arg1: i32) -> (i32, i32) {
    %c0_i32 = arith.constant 0 : i32
    %c0_i32_0 = arith.constant 0 : i32
    return %c0_i32, %arg1 : i32, i32
  }
  func.func @transform_2(%arg0: i32, %arg1: i32) -> (i32, i32) {
    %c0_i32 = arith.constant 0 : i32
    %c0_i32_0 = arith.constant 0 : i32
    return %arg1, %c0_i32 : i32, i32
  }
  func.func @transform_3(%arg0: i32, %arg1: i32) -> (i32, i32) {
    %c0_i32 = arith.constant 0 : i32
    %c0_i32_0 = arith.constant 0 : i32
    return %arg0, %c0_i32 : i32, i32
  }
}

</mosaic_0001>

<bundles_post_ra>
// kernel: tpu_custom_call.1
= control target key start
LH: loop header
LB: loop body
LE: loop exit
PB: predicated region body
PF: predicated region fallthrough
CT: control target
= control target key end

     0   :  { %s2930_s0 = inlined_call_operand.hbm [shape: bf16[256,128], index: 0, kind: input, shape index: {}]   ;;  %s2931_s1 = inlined_call_operand.hbm [shape: bf16[128,1024], index: 1, kind: input, shape index: {}]   ;;  %s2932_s2 = inlined_call_operand.hbm [shape: bf16[512,128], index: 2, kind: input, shape index: {}]   ;;  %s2933_s3 = inlined_call_operand.hbm [shape: f32[256,128], index: 3, kind: output, shape index: {}]  }
   0x1   :  { %2946 = sst [smem:[#allocation19_spill]] %s2930_s0 }
   0x2   :  { %2947 = sst [smem:[#allocation20_spill]] %s2931_s1 }
   0x3   :  { %2948 = sst [smem:[#allocation21_spill]] %s2933_s3 }
   0x4   :  { %8 = vsyncpa [#allocation4], 0 }
   0x5   :  { %10 = vsyncpa [#allocation4 + $0x1], 0 }
   0x6   :  { %11 = vsyncpa [#allocation7], 0 }
   0x7   :  { %13 = vsyncpa [#allocation7 + $0x1], 0 }
   0x8   :  { %14 = vsyncpa [#allocation5], 0 }
   0x9   :  { %16 = vsyncpa [#allocation5 + $0x1], 0  ;;  %s2276_s12 = smov 0   ;;  %s2278_s13 = smov 0  }
   0xa   :  { %s2280_s14 = smov 0   ;;  %s2282_s15 = smov 0  }
   0xb   :  { %s2284_s16 = smov 0   ;;  %s2286_s17 = smov 0  }
   0xc   :  { %s2288_s18 = smov 0   ;;  %s2290_s19 = smov 0  }
   0xd   :  { %s2292_s20 = smov 0   ;;  %s2294_s21 = smov 0  }
   0xe   :  { %s2296_s22 = smov 0  }
   0xf LB: > { %2949 = sst [smem:[#allocation13_spill]] %s2221_s17  ;;  %s31_s23 = sadd.s32 1, %s2233_s20  ;;  %s2241_s22 = sphi %s2296_s22, %s22_s22   ;;  %s2237_s21 = sphi %s2294_s21, %s2985_s21   ;;  %s2233_s20 = sphi %s2292_s20, %s2992_s20   ;;  %s2229_s19 = sphi %s2290_s19, %s2983_s19   ;;  %s2225_s18 = sphi %s2288_s18, %s2991_s18   ;;  %s2221_s17 = sphi %s2286_s17, %s2982_s17   ;;  %s2217_s16 = sphi %s2284_s16, %s2990_s16   ;;  %s2213_s15 = sphi %s2282_s15, %s2989_s15   ;;  %s2209_s14 = sphi %s2280_s14, %s2988_s14   ;;  %s2205_s13 = sphi %s2278_s13, %s2987_s13   ;;  %s2201_s12 = sphi %s2276_s12, %s2986_s12  }
  0x10   : > { %2950 = sst [smem:[#allocation14_spill]] %s2237_s21  ;;  %p2935_p0 = scmp.eq.s32.totalorder %s2241_s22, 0 }
  0x11   : > { %p2333_p1 = scmp.ge.s32.totalorder %s31_s23, 2  ;;  %s67_s25 = sadd.s32 1, %s2209_s14 }
  0x12   : > { %p74_p2 = scmp.ne.s32.totalorder %s2209_s14, %s2205_s13  ;;  %p2934_p5 = scmp.lt.s32.totalorder %s2241_s22, 4 }
  0x13   : > { %s2994_s23 = smov (%p2333_p1, %s31_s23), 0  ;;  %s177_s27 = sand.u32 1, %s2241_s22  }
  0x14   : > { %2952 = sst [smem:[#allocation15_spill]] %s2994_s23  ;;  %p76_p4 = por %p74_p2, %p2935_p0 }
  0x15   : > { %s64_s26 = ssub.s32 %s2233_s20, %s2994_s23  ;;  %s2936_s28 = sand.u32 1, %s2209_s14  }
  0x16   : > { %p65_p6 = scmp.eq.s32.totalorder %s64_s26, 0  ;;  %s1514_s30 = sshll.u32 %s2936_s28, 8 }
  0x17   : > { %s1621_s4 = sshll.u32 %s2233_s20, 8  ;;  %s2954_s1 = sld [smem:[#allocation20_spill]] }
  0x18   : > { %s2354_s29 = scalar_select %p65_p6, %s2209_s14, %s67_s25  }
  0x19   : > { %s181_s8 = scalar_lea.vmem [#allocation6], %s1514_s30  ;;  %p2366_p7 = pnand %p2934_p5, %p76_p4 }
  0x1a   : > { %2953 = sst [smem:[#allocation16_spill]] %s2354_s29  ;;  %s188_s9 = sshll.u32 %s181_s8, 4  ;;  %s2370_s9 = int_to_ptr.vmem [resolvable:$true] %s188_s9 }
  0x1b   : > { %s2373_s11 = scalar_lea.sflag [#allocation7], %s177_s27  ;;  %p2937_p10 = pneg %p2366_p7 }
  0x1d   : > { %s2362_s7 = scalar_lea.hbm %s2954_s1, %s1621_s4  ;;  %s2030_s4 = scalar_lea.hbm %s2954_s1, 8192 }
  0x1e   : > { %s2025_s25 = scalar_lea.hbm %s2362_s7, 4096  ;;  %p2031_p13 = scmp.lt.u32.totalorder %s2362_s7, %s2954_s1 }
  0x1f   : > { %p2026_p9 = scmp.ne.s32.totalorder %s2362_s7, %s2025_s25  ;;  %p2032_p2 = scmp.lt.u32.totalorder %s2030_s4, %s2025_s25 }
  0x20   : > { %p2034_p6 = scmp.lt.u32.totalorder %s2025_s25, %s2362_s7 }
  0x21   : > { %p2028_p11 = pnand %p2937_p10, %p2026_p9  ;;  %p2033_p4 = por %p2032_p2, %p2031_p13 }
  0x23   : > { %p2029_p12 = pneg %p2028_p11  ;;  %p2035_p5 = por %p2034_p6, %p2033_p4 }
  0x25   : > { %p2036_p3 = pnand %p2035_p5, %p2029_p12 }
  0x27   : > { %2039 = shalt.err (!%p2036_p3)
}
  0x28   : > { %s2040_s27 = scalar_lea.vmem %s2370_s9, 4096  ;;  %s2243_s8 = smov [#allocation6]  }
  0x29   : > { %p2041_p9 = scmp.ne.s32.totalorder %s2370_s9, %s2040_s27  ;;  %s2045_s26 = sshll.u32 %s2243_s8, 4  ;;  %s2046_s26 = int_to_ptr.vmem [resolvable:$false] %s2045_s26 }
  0x2a   : > { %s2047_s30 = scalar_lea.vmem %s2046_s26, 8192  ;;  %p2048_p8 = scmp.lt.s32.totalorder %s2370_s9, %s2046_s26 }
  0x2b   : > { %p2043_p11 = pnand %p2041_p9, %p2937_p10  ;;  %p2049_p13 = scmp.lt.s32.totalorder %s2047_s30, %s2040_s27 }
  0x2d   : > { %p2044_p0 = pneg %p2043_p11  ;;  %p2050_p2 = por %p2049_p13, %p2048_p8 }
  0x2f   : > { %p2051_p4 = pnand %p2050_p2, %p2044_p0 }
  0x31   : > { %2054 = shalt.err (!%p2051_p4)
}
  0x32   : > { %s2244_s25 = smov 512   ;;  %s2245_s4 = smov 256  }
  0x33   : > { %s2246_s5 = smov 16   ;;  %p217_p0 = scmp.lt.s32.totalorder %s2241_s22, 5 }
  0x34   : > { %1718 = dma.hbm_to_vmem [thread:$0]  (!%p2366_p7), %s2362_s7, 4096, %s2370_s9, %s2373_s11, %s2244_s25, %s2245_s4, %s2246_s5  }
  0x35   : > { %p2956_p3 = scmp.ge.s32.totalorder %s2241_s22, 1  ;;  %s2409_s27 = sadd.s32 4294967295, %s2241_s22  }
  0x36   : > { %s1508_s8 = sadd.s32 4294967294, %s2241_s22   ;;  %s34_s26 = sadd.s32 1, %s2237_s21 }
  0x37   : > { %p2404_p5 = pnand %p2956_p3, %p217_p0  ;;  %s41_s30 = sadd.s32 1, %s2221_s17 }
  0x38   : > { %s2996_s26 = smov (!%p2333_p1, %s34_s26), %s2237_s21  ;;  %p48_p8 = scmp.ne.s32.totalorder %s2221_s17, %s2217_s16 }
  0x39   : > { %s2957_s6 = scalar_select %p2404_p5, 1, 0 }
  0x3a   : > { %p54_p12 = scmp.ne.s32.totalorder %s2217_s16, %s2213_s15  ;;  %p36_p6 = scmp.ge.s32.totalorder %s2996_s26, 2 }
  0x3b   : > { %p55_p9 = scmp.eq.s32.totalorder %s2409_s27, 0  ;;  %p2958_p11 = scmp.eq.s32.totalorder %s2241_s22, 0 }
  0x3c   : > { %p130_p2 = scmp.eq.s32.totalorder %s2409_s27, 3  ;;  %s2998_s26 = smov (%p36_p6, %s2996_s26), 0 }
  0x3d   : > { %p2424_p13 = por %p2958_p11, %p48_p8  ;;  %2960 = sst [smem:[#allocation17_spill]] %s2998_s26 }
  0x3e   : > { %p2434_p1 = por %p55_p9, %p54_p12  ;;  %p2962_p4 = scmp.ne.s32.totalorder %s2205_s13, %s2201_s12 }
  0x3f   : > { %s38_s25 = ssub.s32 %s2237_s21, %s2998_s26  ;;  %p2447_p3 = por %p130_p2, %p48_p8 }
  0x40   : > { %s2961_s24 = scalar_select %p2434_p1, 1, 0 }
  0x41   : > { %p2441_p0 = por %p2962_p4, %p55_p9  ;;  %p39_p11 = scmp.eq.s32.totalorder %s38_s25, 0 }
  0x42   : > { %s2964_s4 = scalar_select %p2447_p3, 1, 0 }
  0x43   : > { %s2963_s9 = scalar_select %p2441_p0, 1, 0 }
  0x44   : > { %p136_p6 = scmp.eq.s32.totalorder %s1508_s8, 3  ;;  %s156_s5 = sand.u32 1, %s2221_s17  }
  0x45   : > { %s1620_s28 = sshll.u32 %s2237_s21, 10  ;;  %s1511_s12 = sshll.u32 %s156_s5, 6 }
  0x46   : > { %s2454_s1 = scalar_select %p39_p11, %s2221_s17, %s41_s30  }
  0x47   : > { %p2459_p10 = por %p136_p6, %p54_p12  ;;  %s2967_s0 = sld [smem:[#allocation19_spill]] }
  0x48   : > { %2965 = sst [smem:[#allocation18_spill]] %s2454_s1  ;;  %p2968_p8 = scmp.lt.s32.totalorder %s2241_s22, 4 }
  0x49   : > { %s2966_s23 = scalar_select %p2459_p10, 1, 0 }
  0x4a   : > { %p2472_p9 = pnand %p2968_p8, %p2424_p13  ;;  %s160_s30 = scalar_lea.vmem [#allocation3], %s1511_s12 }
  0x4b   : > { %s167_s25 = sshll.u32 %s160_s30, 4  ;;  %s2970_s21 = sand.u32 1, %s2209_s14   ;;  %s2476_s25 = int_to_ptr.vmem [resolvable:$true] %s167_s25 }
  0x4c   : > { %s2480_s3 = sshll.u32 %s2970_s21, 7  ;;  %p2057_p2 = pneg %p2472_p9 }
  0x4d   : > { %s2466_s26 = scalar_lea.hbm %s2967_s0, %s1620_s28  ;;  %s2482_s28 = scalar_lea.sflag [#allocation4], %s156_s5 }
  0x4e   : > { %s2055_s29 = scalar_lea.hbm %s2466_s26, 1024  ;;  %s2060_s12 = scalar_lea.hbm %s2967_s0, 2048 }
  0x4f   : > { %p2056_p12 = scmp.ne.s32.totalorder %s2466_s26, %s2055_s29  ;;  %p2061_p11 = scmp.lt.u32.totalorder %s2466_s26, %s2967_s0 }
  0x50   : > { %p2062_p6 = scmp.lt.u32.totalorder %s2060_s12, %s2055_s29  ;;  %p2064_p10 = scmp.lt.u32.totalorder %s2055_s29, %s2466_s26 }
  0x51   : > { %p2058_p13 = pnand %p2057_p2, %p2056_p12 }
  0x52   : > { %p2063_p8 = por %p2062_p6, %p2061_p11 }
  0x53   : > { %p2059_p4 = pneg %p2058_p13 }
  0x54   : > { %p2065_p3 = por %p2064_p10, %p2063_p8 }
  0x56   : > { %p2066_p0 = pnand %p2065_p3, %p2059_p4 }
  0x58   : > { %2069 = shalt.err (!%p2066_p0)
}
  0x59   : > { %s2070_s21 = scalar_lea.vmem %s2476_s25, 1024  ;;  %s2247_s1 = smov [#allocation3]  }
  0x5a   : > { %p2071_p12 = scmp.ne.s32.totalorder %s2476_s25, %s2070_s21  ;;  %s2075_s5 = sshll.u32 %s2247_s1, 4  ;;  %s2076_s5 = int_to_ptr.vmem [resolvable:$false] %s2075_s5 }
  0x5b   : > { %s2077_s17 = scalar_lea.vmem %s2076_s5, 2048  ;;  %p2078_p5 = scmp.lt.s32.totalorder %s2476_s25, %s2076_s5 }
  0x5c   : > { %p2073_p13 = pnand %p2071_p12, %p2057_p2  ;;  %p2079_p11 = scmp.lt.s32.totalorder %s2077_s17, %s2070_s21 }
  0x5e   : > { %p2074_p1 = pneg %p2073_p13  ;;  %p2080_p6 = por %p2079_p11, %p2078_p5 }
  0x60   : > { %p2081_p10 = pnand %p2080_p6, %p2074_p1 }
  0x62   : > { %2084 = shalt.err (!%p2081_p10)
}
  0x63   : > { %s2248_s29 = smov 64   ;;  %s2249_s7 = smov 4  }
  0x64   : > { %1715 = dma.hbm_to_vmem [thread:$0]  (!%p2472_p9), %s2466_s26, 1024, %s2476_s25, %s2482_s28, %s2248_s29, %s2248_s29, %s2249_s7  }
  0x65   : > { %s1622_s12 = sshll.u32 %s2233_s20, 11  ;;  %s202_s5 = scalar_lea.vmem [#allocation8], %s2480_s3 }
  0x66   : > { %s2517_s1 = scalar_lea.hbm %s2932_s2, %s1622_s12  ;;  %s209_s17 = sshll.u32 %s202_s5, 4  ;;  %s2520_s17 = int_to_ptr.vmem [resolvable:$true] %s209_s17 }
  0x67   : > { %s2085_s0 = scalar_lea.hbm %s2517_s1, 2048  ;;  %p2971_p1 = pneg %p2366_p7 }
  0x68   : > { %p2086_p5 = scmp.ne.s32.totalorder %s2517_s1, %s2085_s0  ;;  %s2090_s25 = scalar_lea.hbm %s2932_s2, 4096 }
  0x69   : > { %p2091_p9 = scmp.lt.u32.totalorder %s2517_s1, %s2932_s2  ;;  %p2092_p2 = scmp.lt.u32.totalorder %s2090_s25, %s2085_s0 }
  0x6a   : > { %p2088_p0 = pnand %p2086_p5, %p2971_p1  ;;  %p2094_p8 = scmp.lt.u32.totalorder %s2085_s0, %s2517_s1 }
  0x6b   : > { %p2093_p4 = por %p2092_p2, %p2091_p9 }
  0x6c   : > { %p2089_p3 = pneg %p2088_p0 }
  0x6d   : > { %p2095_p12 = por %p2094_p8, %p2093_p4 }
  0x6f   : > { %p2096_p13 = pnand %p2095_p12, %p2089_p3 }
  0x71   : > { %2099 = shalt.err (!%p2096_p13)
}
  0x72   : > { %s2100_s3 = scalar_lea.vmem %s2520_s17, 2048  ;;  %p2972_p6 = pmov %p2971_p1 }
  0x73   : > { %p2101_p11 = scmp.ne.s32.totalorder %s2520_s17, %s2100_s3  ;;  %s2250_s30 = smov [#allocation8]  }
  0x74   : > { %s2105_s21 = sshll.u32 %s2250_s30, 4  ;;  %s2106_s21 = int_to_ptr.vmem [resolvable:$false] %s2105_s21 }
  0x75   : > { %p2103_p10 = pnand %p2101_p11, %p2972_p6  ;;  %s2107_s5 = scalar_lea.vmem %s2106_s21, 4096 }
  0x76   : > { %p2108_p1 = scmp.lt.s32.totalorder %s2520_s17, %s2106_s21  ;;  %p2109_p0 = scmp.lt.s32.totalorder %s2107_s5, %s2100_s3 }
  0x77   : > { %p2104_p5 = pneg %p2103_p10 }
  0x78   : > { %p2110_p9 = por %p2109_p0, %p2108_p1 }
  0x7a   : > { %p2111_p2 = pnand %p2110_p9, %p2104_p5 }
  0x7c   : > { %2114 = shalt.err (!%p2111_p2)
}
  0x7d   : > { %1721 = dma.hbm_to_vmem [thread:$0]  (!%p2366_p7), %s2517_s1, 2048, %s2520_s17, %s2373_s11, %s2248_s29, %s2248_s29, %s2249_s7  }
  0x7e   : > { %p2973_p3 = scmp.ne.s32.totalorder %s2957_s6, 0 }
  0x7f   : > { %s2552_s0 = sand.u32 (!%p2973_p3), 1, %s2217_s16   ;;  %p2974_p4 = scmp.ne.s32.totalorder (!%p2973_p3), %s2961_s24, 0 }
  0x80   : > { %221 = sbr.rel (%p2973_p3) target bundleno = 776 (0x308), region = 32  ;;  %s1521_s26 = sshll.u32 (!%p2973_p3), %s2552_s0, 6 }
  0x81   : > { %s224_s8 = scalar_lea.sflag (!%p2973_p3), [#allocation4], %s2552_s0  ;;  %s2556_s25 = scalar_lea.vmem (!%p2973_p3), [#allocation3], %s1521_s26 }
  0x87   : > { %2188 = dma.done.wait (%p2974_p4), %s224_s8, 1024  }
  0x88   : > { %2190 = vsyncadd (%p2974_p4), %s224_s8, 4294966272  ;;  %s232_s10 = sand.u32 1, %s2409_s27   ;;  %s234_s11 = sand.u32 1, %s2205_s13  }
  0x89   : > { %s1522_s6 = sshll.u32 %s234_s11, 8  ;;  %s233_s29 = scalar_lea.sflag [#allocation7], %s232_s10 }
  0x8a   : > { %s2564_s7 = scalar_lea.vmem [#allocation6], %s1522_s6  ;;  %p2975_p7 = scmp.ne.s32.totalorder %s2963_s9, 0 }
  0x8c   : > { %2192 = dma.done.wait (%p2975_p7), %s233_s29, 6144  }
  0x8d   : > { %2194 = vsyncadd (%p2975_p7), %s233_s29, 4294961152  ;;  %s1523_s1 = sshll.u32 %s234_s11, 7  ;;  %s1524_s17 = sshll.u32 %s2552_s0, 7 }
  0x8e   : > { %s2571_s28 = scalar_lea.vmem [#allocation8], %s1523_s1  ;;  %s2573_s24 = scalar_lea.vmem [#allocation9], %s1524_s17 }
  0x8f   : > { %p1525_p8 = scmp.ne.s32.totalorder %s2225_s18, 0 }
  0x90   : > { %v2251_v0 = vmov (!%p1525_p8), 0.0  }
  0x91   : > { %286 = sbr.rel (%p1525_p8) target bundleno = 153 (0x99), region = 48  ;;  %287 = vst [vmem:[#allocation2] sm:$0xff] (!%p1525_p8), %v2251_v0  ;;  %288 = vst [vmem:[#allocation2 + $0x8] sm:$0xff] (!%p1525_p8), %v2251_v0 }
  0x92   : > { %289 = vst [vmem:[#allocation2 + $0x10] sm:$0xff] (!%p1525_p8), %v2251_v0  ;;  %290 = vst [vmem:[#allocation2 + $0x18] sm:$0xff] (!%p1525_p8), %v2251_v0 }
  0x93   : > { %291 = vst [vmem:[#allocation2 + $0x20] sm:$0xff] (!%p1525_p8), %v2251_v0  ;;  %292 = vst [vmem:[#allocation2 + $0x28] sm:$0xff] (!%p1525_p8), %v2251_v0 }
  0x94   : > { %293 = vst [vmem:[#allocation2 + $0x30] sm:$0xff] (!%p1525_p8), %v2251_v0  ;;  %294 = vst [vmem:[#allocation2 + $0x38] sm:$0xff] (!%p1525_p8), %v2251_v0 }
  0x95   : > { %295 = vst [vmem:[#allocation2 + $0x40] sm:$0xff] (!%p1525_p8), %v2251_v0  ;;  %296 = vst [vmem:[#allocation2 + $0x48] sm:$0xff] (!%p1525_p8), %v2251_v0 }
  0x96   : > { %297 = vst [vmem:[#allocation2 + $0x50] sm:$0xff] (!%p1525_p8), %v2251_v0  ;;  %298 = vst [vmem:[#allocation2 + $0x58] sm:$0xff] (!%p1525_p8), %v2251_v0 }
  0x97   : > { %299 = vst [vmem:[#allocation2 + $0x60] sm:$0xff] (!%p1525_p8), %v2251_v0  ;;  %300 = vst [vmem:[#allocation2 + $0x68] sm:$0xff] (!%p1525_p8), %v2251_v0 }
  0x98   : > { %301 = vst [vmem:[#allocation2 + $0x70] sm:$0xff] %v2251_v0  ;;  %302 = vst [vmem:[#allocation2 + $0x78] sm:$0xff] %v2251_v0 }
  0x99 PF: > { %v1825_v1 = vld [vmem:[%s2564_s7 + $0x4] ss:$16 sps:$4 sm:$0xff]   ;;  %v1827_v2 = vld [vmem:[%s2564_s7] ss:$16 sps:$4 sm:$0xff]   ;;  %v2252_v3 = vmov 0   ;;  %v1857_v25 = vld [vmem:[%s2556_s25 + $0x8] sm:$0xff]  }
  0x9a   : > { %623 = vmatprep.mubr.bf16.mxu0 %v2252_v3  ;;  %663 = vmatprep.mubr.bf16.mxu1 %v2252_v3  ;;  %v1828_v4 = vld [vmem:[%s2564_s7 + $0x24] ss:$16 sps:$4 sm:$0xff]   ;;  %v1830_v5 = vld [vmem:[%s2564_s7 + $0x20] ss:$16 sps:$4 sm:$0xff]   ;;  %v1853_v20 = vld [vmem:[%s2564_s7 + $0xc] ss:$16 sps:$4 sm:$0xff]  }
  0x9b   : > { %591 = vmatprep.subr.bf16.mxu0 %v1825_v1  ;;  %1688 = vmatprep.subr.bf16.mxu1 %v1825_v1  ;;  %v1831_v6 = vld [vmem:[%s2564_s7 + $0x44] ss:$16 sps:$4 sm:$0xff]   ;;  %v1833_v7 = vld [vmem:[%s2564_s7 + $0x40] ss:$16 sps:$4 sm:$0xff]   ;;  %v1851_v21 = vld [vmem:[%s2564_s7 + $0x8] ss:$16 sps:$4 sm:$0xff]  }
  0x9c   : > { %592 = vmatpush1.bf16.msra.mxu0 %v1827_v2  ;;  %1696 = vmatpush1.bf16.msra.mxu1 %v1827_v2  ;;  %v1834_v8 = vld [vmem:[%s2564_s7 + $0x64] ss:$16 sps:$4 sm:$0xff]   ;;  %v1836_v9 = vld [vmem:[%s2564_s7 + $0x60] ss:$16 sps:$4 sm:$0xff]   ;;  %v1856_v22 = vld [vmem:[%s2564_s7 + $0x2c] ss:$16 sps:$4 sm:$0xff]  }
  0x9d   : > { %593 = vmatprep.subr.bf16.mxu0 %v1828_v4  ;;  %1689 = vmatprep.subr.bf16.mxu1 %v1828_v4  ;;  %v1837_v10 = vld [vmem:[%s2564_s7 + $0x84] ss:$16 sps:$4 sm:$0xff]   ;;  %v1839_v11 = vld [vmem:[%s2564_s7 + $0x80] ss:$16 sps:$4 sm:$0xff]   ;;  %v1854_v23 = vld [vmem:[%s2564_s7 + $0x28] ss:$16 sps:$4 sm:$0xff]  }
  0x9e   : > { %v1840_v12 = vld [vmem:[%s2564_s7 + $0xa4] ss:$16 sps:$4 sm:$0xff]   ;;  %v1842_v13 = vld [vmem:[%s2564_s7 + $0xa0] ss:$16 sps:$4 sm:$0xff]   ;;  %v1861_v24 = vld [vmem:[%s2564_s7 + $0x4c] ss:$16 sps:$4 sm:$0xff]  }
  0x9f   : > { %v1843_v14 = vld [vmem:[%s2564_s7 + $0xc4] ss:$16 sps:$4 sm:$0xff]   ;;  %v1845_v15 = vld [vmem:[%s2564_s7 + $0xc0] ss:$16 sps:$4 sm:$0xff]   ;;  %v1858_v26 = vld [vmem:[%s2556_s25 + $0x28] sm:$0xff]   ;;  %p1614_p12 = scmp.ne.s32.totalorder %s2225_s18, 1 }
  0xa0   : > { %594 = vmatpush1.bf16.msra.mxu0 %v1830_v5  ;;  %1697 = vmatpush1.bf16.msra.mxu1 %v1830_v5  ;;  %v1846_v16 = vld [vmem:[%s2564_s7 + $0xe4] ss:$16 sps:$4 sm:$0xff]   ;;  %v1848_v17 = vld [vmem:[%s2564_s7 + $0xe0] ss:$16 sps:$4 sm:$0xff]   ;;  %v1859_v27 = vld [vmem:[%s2564_s7 + $0x48] ss:$16 sps:$4 sm:$0xff]  }
  0xa1   : > { %595 = vmatprep.subr.bf16.mxu0 %v1831_v6  ;;  %1690 = vmatprep.subr.bf16.mxu1 %v1831_v6  ;;  %v1849_v18 = vld [vmem:[%s2556_s25] sm:$0xff]   ;;  %v1864_v28 = vld [vmem:[%s2564_s7 + $0x6c] ss:$16 sps:$4 sm:$0xff]   ;;  %v1862_v29 = vld [vmem:[%s2564_s7 + $0x68] ss:$16 sps:$4 sm:$0xff]  }
  0xa2   : > { %v2596_v19 = vld [vmem:[%s2556_s25 + $0x20] sm:$0xff]   ;;  %v1869_v30 = vld [vmem:[%s2564_s7 + $0x8c] ss:$16 sps:$4 sm:$0xff]   ;;  %v1865_v31 = vld [vmem:[%s2556_s25 + $0x10] sm:$0xff]  }
  0xa3   : > { %v1866_v32 = vld [vmem:[%s2556_s25 + $0x30] sm:$0xff]   ;;  %v1867_v33 = vld [vmem:[%s2564_s7 + $0x88] ss:$16 sps:$4 sm:$0xff]   ;;  %v1872_v34 = vld [vmem:[%s2564_s7 + $0xac] ss:$16 sps:$4 sm:$0xff]  }
  0xa4   : > { %596 = vmatpush1.bf16.msra.mxu0 %v1833_v7  ;;  %1698 = vmatpush1.bf16.msra.mxu1 %v1833_v7  ;;  %v1870_v35 = vld [vmem:[%s2564_s7 + $0xa8] ss:$16 sps:$4 sm:$0xff]   ;;  %v1877_v36 = vld [vmem:[%s2564_s7 + $0xcc] ss:$16 sps:$4 sm:$0xff]   ;;  %v1881_v42 = vld [vmem:[%s2571_s28 + $0x40] sm:$0xff]  }
  0xa5   : > { %597 = vmatprep.subr.bf16.mxu0 %v1834_v8  ;;  %1691 = vmatprep.subr.bf16.mxu1 %v1834_v8  ;;  %v1873_v37 = vld [vmem:[%s2556_s25 + $0x18] sm:$0xff]   ;;  %v1882_v43 = vld [vmem:[%s2571_s28] sm:$0xff]   ;;  %v1883_v44 = vld [vmem:[%s2571_s28 + $0x48] sm:$0xff]  }
  0xa6   : > { %v1874_v38 = vld [vmem:[%s2556_s25 + $0x38] sm:$0xff]   ;;  %v1884_v45 = vld [vmem:[%s2571_s28 + $0x8] sm:$0xff]   ;;  %v1885_v46 = vld [vmem:[%s2571_s28 + $0x50] sm:$0xff]  }
  0xa7   : > { %v1875_v39 = vld [vmem:[%s2564_s7 + $0xc8] ss:$16 sps:$4 sm:$0xff]   ;;  %v1880_v40 = vld [vmem:[%s2564_s7 + $0xec] ss:$16 sps:$4 sm:$0xff]   ;;  %v1886_v47 = vld [vmem:[%s2571_s28 + $0x10] sm:$0xff]  }
  0xa8   : > { %598 = vmatpush1.bf16.msra.mxu0 %v1836_v9  ;;  %1699 = vmatpush1.bf16.msra.mxu1 %v1836_v9  ;;  %v1878_v41 = vld [vmem:[%s2564_s7 + $0xe8] ss:$16 sps:$4 sm:$0xff]   ;;  %v1889_v50 = vld [vmem:[%s2571_s28 + $0x60] sm:$0xff]   ;;  %v1893_v54 = vld [vmem:[%s2571_s28 + $0x70] sm:$0xff]  }
  0xa9   : > { %599 = vmatprep.subr.bf16.mxu0 %v1837_v10  ;;  %1692 = vmatprep.subr.bf16.mxu1 %v1837_v10  ;;  %v1887_v48 = vld [vmem:[%s2571_s28 + $0x58] sm:$0xff]   ;;  %v1890_v51 = vld [vmem:[%s2571_s28 + $0x20] sm:$0xff]   ;;  %v1891_v52 = vld [vmem:[%s2571_s28 + $0x68] sm:$0xff]  }
  0xaa   : > { %v1888_v49 = vld [vmem:[%s2571_s28 + $0x18] sm:$0xff]   ;;  %v1892_v53 = vld [vmem:[%s2571_s28 + $0x28] sm:$0xff]   ;;  %v1894_v55 = vld [vmem:[%s2571_s28 + $0x30] sm:$0xff]  }
  0xab   : > { %v1895_v56 = vld [vmem:[%s2571_s28 + $0x78] sm:$0xff]  }
  0xac   : > { %600 = vmatpush1.bf16.msra.mxu0 %v1839_v11  ;;  %1700 = vmatpush1.bf16.msra.mxu1 %v1839_v11  ;;  %v1896_v57 = vld [vmem:[%s2571_s28 + $0x38] sm:$0xff]  }
  0xad   : > { %601 = vmatprep.subr.bf16.mxu0 %v1840_v12  ;;  %1693 = vmatprep.subr.bf16.mxu1 %v1840_v12 }
  0xb0   : > { %602 = vmatpush1.bf16.msra.mxu0 %v1842_v13  ;;  %1701 = vmatpush1.bf16.msra.mxu1 %v1842_v13 }
  0xb1   : > { %603 = vmatprep.subr.bf16.mxu0 %v1843_v14  ;;  %1694 = vmatprep.subr.bf16.mxu1 %v1843_v14 }
  0xb4   : > { %604 = vmatpush1.bf16.msra.mxu0 %v1845_v15  ;;  %1702 = vmatpush1.bf16.msra.mxu1 %v1845_v15 }
  0xb5   : > { %605 = vmatprep.subr.bf16.mxu0 %v1846_v16  ;;  %1695 = vmatprep.subr.bf16.mxu1 %v1846_v16 }
  0xb8   : > { %606 = vmatpush1.bf16.msra.mxu0 %v1848_v17  ;;  %1703 = vmatpush1.bf16.msra.mxu1 %v1848_v17 }
  0xb9   : > { %704 = vmatprep.subr.bf16.mxu1 %v1853_v20  ;;  %1624 = vmatprep.subr.bf16.mxu0 %v1881_v42 }
  0xbb   : > { %624 = vmatmul.mubr.bf16.vlgmr.msra.gmra.mrb[0].mxu0 %v1849_v18  ;;  %664 = vmatmul.mubr.bf16.vlgmr.msra.gmra.mrb[0].mxu1 %v2596_v19 }
  0xbc   : > { %705 = vmatpush1.bf16.msra.mxu1 %v1851_v21  ;;  %633 = vmatprep.mubr.bf16.mxu0 %v2252_v3 }
  0xbd   : > { %706 = vmatprep.subr.bf16.mxu1 %v1856_v22  ;;  %673 = vmatprep.mubr.bf16.mxu1 %v2252_v3 }
  0xbe   : > { %1625 = vmatpush3.bf16.msra.mxu0 %v1882_v43 }
  0xbf   : > { %1626 = vmatprep.subr.bf16.mxu0 %v1883_v44 }
  0xc0   : > { %707 = vmatpush1.bf16.msra.mxu1 %v1854_v23 }
  0xc1   : > { %708 = vmatprep.subr.bf16.mxu1 %v1861_v24 }
  0xc2   : > { %1627 = vmatpush3.bf16.msra.mxu0 %v1884_v45 }
  0xc3   : > { %634 = vmatmul.mubr.bf16.gmra.mrb[4].mxu0 %v1857_v25  ;;  %674 = vmatmul.mubr.bf16.gmra.mrb[4].mxu1 %v1858_v26 }
  0xc4   : > { %709 = vmatpush1.bf16.msra.mxu1 %v1859_v27  ;;  %643 = vmatprep.mubr.bf16.mxu0 %v2252_v3 }
  0xc5   : > { %710 = vmatprep.subr.bf16.mxu1 %v1864_v28  ;;  %683 = vmatprep.mubr.bf16.mxu1 %v2252_v3 }
  0xc6   : > { %1628 = vmatprep.subr.bf16.mxu0 %v1885_v46 }
  0xc7   : > { %1629 = vmatpush3.bf16.msra.mxu0 %v1886_v47 }
  0xc8   : > { %711 = vmatpush1.bf16.msra.mxu1 %v1862_v29  ;;  %1630 = vmatprep.subr.bf16.mxu0 %v1887_v48 }
  0xc9   : > { %712 = vmatprep.subr.bf16.mxu1 %v1869_v30 }
  0xcb   : > { %644 = vmatmul.mubr.bf16.gmra.mrb[8].mxu0 %v1865_v31  ;;  %684 = vmatmul.mubr.bf16.gmra.mrb[8].mxu1 %v1866_v32 }
  0xcc   : > { %713 = vmatpush1.bf16.msra.mxu1 %v1867_v33  ;;  %653 = vmatprep.mubr.bf16.mxu0 %v2252_v3 }
  0xcd   : > { %714 = vmatprep.subr.bf16.mxu1 %v1872_v34  ;;  %693 = vmatprep.mubr.bf16.mxu1 %v2252_v3 }
  0xce   : > { %1631 = vmatpush3.bf16.msra.mxu0 %v1888_v49 }
  0xcf   : > { %1632 = vmatprep.subr.bf16.mxu0 %v1889_v50 }
  0xd0   : > { %715 = vmatpush1.bf16.msra.mxu1 %v1870_v35 }
  0xd1   : > { %716 = vmatprep.subr.bf16.mxu1 %v1877_v36 }
  0xd2   : > { %1633 = vmatpush3.bf16.msra.mxu0 %v1890_v51 }
  0xd3   : > { %654 = vmatmul.mubr.bf16.gmra.mrb[12].mxu0 %v1873_v37  ;;  %694 = vmatmul.mubr.bf16.gmra.mrb[12].mxu1 %v1874_v38 }
  0xd4   : > { %717 = vmatpush1.bf16.msra.mxu1 %v1875_v39  ;;  %736 = vmatprep.mubr.bf16.mxu1 %v2252_v3 }
  0xd5   : > { %718 = vmatprep.subr.bf16.mxu1 %v1880_v40  ;;  %1634 = vmatprep.subr.bf16.mxu0 %v1891_v52 }
  0xd6   : > { %1635 = vmatpush3.bf16.msra.mxu0 %v1892_v53 }
  0xd7   : > { %1636 = vmatprep.subr.bf16.mxu0 %v1893_v54 }
  0xd8   : > { %719 = vmatpush1.bf16.msra.mxu1 %v1878_v41 }
  0xda   : > { %1637 = vmatpush3.bf16.msra.mxu0 %v1894_v55 }
  0xdb   : > { %737 = vmatmul.mubr.bf16.vlgmr.msra.gmra.mrb[16].mxu1 %v1849_v18  ;;  %1638 = vmatprep.subr.bf16.mxu0 %v1895_v56 }
  0xdc   : > { %746 = vmatprep.mubr.bf16.mxu1 %v2252_v3 }
  0xde   : > { %1639 = vmatpush3.bf16.msra.mxu0 %v1896_v57 }
  0xe3   : > { %747 = vmatmul.mubr.bf16.gmra.mrb[20].mxu1 %v1857_v25 }
  0xe4   : > { %756 = vmatprep.mubr.bf16.mxu1 %v2252_v3 }
  0xeb   : > { %757 = vmatmul.mubr.bf16.gmra.mrb[24].mxu1 %v1865_v31 }
  0xec   : > { %766 = vmatprep.mubr.bf16.mxu1 %v2252_v3 }
  0xf3   : > { %767 = vmatmul.mubr.bf16.gmra.mrb[28].mxu1 %v1873_v37 }
  0xf4   : > { %776 = vmatprep.mubr.bf16.mxu1 %v2252_v3 }
  0xfb   : > { %777 = vmatmul.mubr.bf16.gmra.mrb[32].mxu1 %v2596_v19 }
  0xfc   : > { %786 = vmatprep.mubr.bf16.mxu1 %v2252_v3 }
 0x103   : > { %787 = vmatmul.mubr.bf16.gmra.mrb[36].mxu1 %v1858_v26 }
 0x104   : > { %796 = vmatprep.mubr.bf16.mxu1 %v2252_v3 }
 0x10b   : > { %797 = vmatmul.mubr.bf16.gmra.mrb[40].mxu1 %v1866_v32 }
 0x10c   : > { %806 = vmatprep.mubr.bf16.mxu1 %v2252_v3 }
 0x113   : > { %807 = vmatmul.mubr.bf16.gmra.mrb[44].mxu1 %v1874_v38 }
 0x18e   : > { %v2652_v58 = vpop.f32.mrb[0].mxu0  ;;  %v2654_v59 = vpop.f32.mrb[0].mxu1 }
 0x18f   : > { %v1566_v60 = vmul.f32 -1.442695, %v2652_v58  ;;  %v2657_v61 = vpop.f32.mrb[1].mxu0  ;;  %v2659_v62 = vpop.f32.mrb[1].mxu1  ;;  %v1582_v6 = vmul.f32 -1.442695, %v2654_v59 }
 0x190   : > { %v1567_v63 = vmul.f32 -1.442695, %v2657_v61  ;;  %v2662_v0 = vpop.f32.mrb[2].mxu0  ;;  %v2664_v1 = vpop.f32.mrb[2].mxu1  ;;  %v1583_v12 = vmul.f32 -1.442695, %v2659_v62 }
 0x191   : > { %1897 = vpow2.f32 %v1566_v60  ;;  %v1568_v2 = vmul.f32 -1.442695, %v2662_v0  ;;  %v2667_v3 = vpop.f32.mrb[3].mxu0  ;;  %v2669_v4 = vpop.f32.mrb[3].mxu1  ;;  %v1584_v19 = vmul.f32 -1.442695, %v2664_v1 }
 0x192   : > { %1899 = vpow2.f32 %v1567_v63  ;;  %v1569_v5 = vmul.f32 -1.442695, %v2667_v3  ;;  %v1585_v21 = vmul.f32 -1.442695, %v2669_v4 }
 0x193   : > { %1901 = vpow2.f32 %v1568_v2 }
 0x194   : > { %1903 = vpow2.f32 %v1569_v5 }
 0x196   : > { %v2673_v7 = vpop.f32.mrb[4].mxu0  ;;  %v2675_v8 = vpop.f32.mrb[4].mxu1 }
 0x197   : > { %v1570_v9 = vmul.f32 -1.442695, %v2673_v7  ;;  %v2678_v10 = vpop.f32.mrb[5].mxu0  ;;  %v2680_v11 = vpop.f32.mrb[5].mxu1  ;;  %v1586_v28 = vmul.f32 -1.442695, %v2675_v8 }
 0x198   : > { %v1571_v13 = vmul.f32 -1.442695, %v2678_v10  ;;  %v2684_v14 = vpop.f32.mrb[6].mxu0  ;;  %v2686_v15 = vpop.f32.mrb[6].mxu1  ;;  %v1587_v36 = vmul.f32 -1.442695, %v2680_v11 }
 0x199   : > { %1905 = vpow2.f32 %v1570_v9  ;;  %v1572_v16 = vmul.f32 -1.442695, %v2684_v14  ;;  %v2689_v17 = vpop.f32.mrb[7].mxu0  ;;  %v2691_v18 = vpop.f32.mrb[7].mxu1 }
 0x19a   : > { %1907 = vpow2.f32 %v1582_v6  ;;  %v1573_v52 = vmul.f32 -1.442695, %v2689_v17 }
 0x19b   : > { %v1898_v20 = vpop.eup %1897  ;;  %1909 = vpow2.f32 %v1571_v13 }
 0x19c   : > { %v913_v22 = vadd.f32 1.0, %v1898_v20  ;;  %1911 = vpow2.f32 %v1583_v12  ;;  %v1900_v23 = vpop.eup %1899 }
 0x19d   : > { %1913 = vpow2.f32 %v1572_v16  ;;  %v914_v24 = vadd.f32 1.0, %v1900_v23  ;;  %v1902_v27 = vpop.eup %1901 }
 0x19e   : > { %1915 = vpow2.f32 %v1584_v19  ;;  %v2695_v25 = vpop.f32.mrb[8].mxu0  ;;  %v2697_v26 = vpop.f32.mrb[8].mxu1  ;;  %v915_v30 = vadd.f32 1.0, %v1902_v27 }
 0x19f   : > { %1917 = vpow2.f32 %v1585_v21  ;;  %v2700_v29 = vpop.f32.mrb[9].mxu0  ;;  %v2702_v31 = vpop.f32.mrb[9].mxu1  ;;  %v1574_v2 = vmul.f32 -1.442695, %v2695_v25 }
 0x1a0   : > { %1919 = vrcp.f32 %v913_v22  ;;  %v2704_v32 = vpop.f32.mrb[10].mxu0  ;;  %v1904_v33 = vpop.eup %1903  ;;  %v1575_v13 = vmul.f32 -1.442695, %v2700_v29 }
 0x1a1   : > { %1921 = vrcp.f32 %v914_v24  ;;  %v2706_v34 = vpop.f32.mrb[10].mxu1  ;;  %v916_v35 = vadd.f32 1.0, %v1904_v33  ;;  %v2709_v37 = vpop.f32.mrb[11].mxu0  ;;  %v1576_v23 = vmul.f32 -1.442695, %v2704_v32 }
 0x1a2   : > { %1923 = vrcp.f32 %v915_v30  ;;  %v2711_v38 = vpop.f32.mrb[11].mxu1 }
 0x1a3   : > { %v1906_v39 = vpop.eup %1905  ;;  %1925 = vpow2.f32 %v1586_v28  ;;  %v1588_v28 = vmul.f32 -1.442695, %v2686_v15 }
 0x1a4   : > { %v1908_v40 = vpop.eup %1907  ;;  %1927 = vrcp.f32 %v916_v35  ;;  %v917_v41 = vadd.f32 1.0, %v1906_v39 }
 0x1a5   : > { %v1910_v42 = vpop.eup %1909  ;;  %1929 = vpow2.f32 %v1587_v36  ;;  %v929_v48 = vadd.f32 1.0, %v1908_v40 }
 0x1a6   : > { %v1912_v43 = vpop.eup %1911  ;;  %v918_v44 = vadd.f32 1.0, %v1910_v42  ;;  %v2713_v45 = vpop.f32.mrb[12].mxu0  ;;  %1931 = vrcp.f32 %v917_v41 }
 0x1a7   : > { %v2715_v46 = vpop.f32.mrb[12].mxu1  ;;  %v1914_v47 = vpop.eup %1913  ;;  %v930_v56 = vadd.f32 1.0, %v1912_v43 }
 0x1a8   : > { %v2717_v49 = vpop.f32.mrb[13].mxu0  ;;  %v1916_v50 = vpop.eup %1915  ;;  %v919_v51 = vadd.f32 1.0, %v1914_v47  ;;  %1933 = vrcp.f32 %v918_v44 }
 0x1a9   : > { %v2720_v53 = vpop.f32.mrb[13].mxu1  ;;  %v2722_v54 = vpop.f32.mrb[14].mxu0  ;;  %v931_v9 = vadd.f32 1.0, %v1916_v50 }
 0x1aa   : > { %v1918_v55 = vpop.eup %1917  ;;  %v2724_v57 = vpop.f32.mrb[14].mxu1  ;;  %1935 = vrcp.f32 %v919_v51 }
 0x1ab   : > { %v2726_v60 = vpop.f32.mrb[15].mxu0  ;;  %v1920_v63 = vpop.eup %1919  ;;  %1937 = vrcp.f32 %v929_v48  ;;  %v932_v20 = vadd.f32 1.0, %v1918_v55 }
 0x1ac   : > { %v2729_v5 = vpop.f32.mrb[15].mxu1  ;;  %v1922_v6 = vpop.eup %1921  ;;  %1939 = vpow2.f32 %v1573_v52  ;;  %v1009_v19 = vmul.f32 %v1920_v63, %v2652_v58  ;;  %v1577_v58 = vmul.f32 -1.442695, %v2709_v37 }
 0x1ad   : > { %v1924_v12 = vpop.eup %1923  ;;  %1941 = vrcp.f32 %v930_v56  ;;  %v1010_v22 = vmul.f32 %v1922_v6, %v2657_v61  ;;  %v1590_v6 = vmul.f32 -1.442695, %v2697_v26 }
 0x1ae   : > { %v1926_v16 = vpop.eup %1925  ;;  %1943 = vpow2.f32 %v1574_v2  ;;  %v738_v24 = vpop.f32.mrb[16].mxu1  ;;  %v1011_v27 = vmul.f32 %v1924_v12, %v2662_v0  ;;  %v1578_v0 = vmul.f32 -1.442695, %v2713_v45 }
 0x1af   : > { %v1928_v21 = vpop.eup %1927  ;;  %1945 = vrcp.f32 %v931_v9  ;;  %v1041_v30 = vmul.f32 %v1009_v19, %v738_v24  ;;  %v740_v33 = vpop.f32.mrb[17].mxu1  ;;  %v933_v61 = vadd.f32 1.0, %v1926_v16 }
 0x1b0   : > { %v1930_v35 = vpop.eup %1929  ;;  %v1012_v36 = vmul.f32 %v1928_v21, %v2667_v3  ;;  %1947 = vpow2.f32 %v1575_v13  ;;  %v1042_v39 = vmul.f32 %v1010_v22, %v740_v33  ;;  %v742_v40 = vpop.f32.mrb[18].mxu1  ;;  %v1589_v3 = vmul.f32 -1.442695, %v2691_v18 }
 0x1b1   : > { %1949 = vrcp.f32 %v932_v20  ;;  %v1043_v41 = vmul.f32 %v1011_v27, %v742_v40  ;;  %v744_v42 = vpop.f32.mrb[19].mxu1  ;;  %v1932_v43 = vpop.eup %1931  ;;  %v934_v48 = vadd.f32 1.0, %v1930_v35  ;;  %v1591_v21 = vmul.f32 -1.442695, %v2702_v31 }
 0x1b2   : > { %1951 = vpow2.f32 %v1576_v23  ;;  %v1044_v44 = vmul.f32 %v1012_v36, %v744_v42  ;;  %v1934_v47 = vpop.eup %1933  ;;  %v1013_v56 = vmul.f32 %v1932_v43, %v2673_v7  ;;  %v1594_v42 = vmul.f32 -1.442695, %v2715_v46 }
 0x1b3   : > { %1953 = vpow2.f32 %v1588_v28  ;;  %v1089_v50 = vpack.c.bf16 %v1043_v41, %v1041_v30  ;;  %v1014_v2 = vmul.f32 %v1934_v47, %v2678_v10  ;;  %v1592_v30 = vmul.f32 -1.442695, %v2706_v34 }
 0x1b4   : > { %v1936_v51 = vpop.eup %1935  ;;  %1955 = vpow2.f32 %v1577_v58  ;;  %v1090_v52 = vpack.c.bf16 %v1044_v44, %v1042_v39  ;;  %v1593_v39 = vmul.f32 -1.442695, %v2711_v38 }
 0x1b5   : > { %v2741_v55 = vpop.eup %1937  ;;  %1957 = vrcp.f32 %v933_v61  ;;  %v1015_v13 = vmul.f32 %v1936_v51, %v2684_v14 }
 0x1b6   : > { %v1940_v63 = vpop.eup %1939  ;;  %1959 = vpow2.f32 %v1578_v0  ;;  %v748_v9 = vpop.f32.mrb[20].mxu1  ;;  %1233 = vmatprep.mubr.bf16.mxu0 %v1090_v52 }
 0x1b7   : > { %v2746_v12 = vpop.eup %1941  ;;  %1961 = vrcp.f32 %v934_v48  ;;  %v920_v16 = vadd.f32 1.0, %v1940_v63  ;;  %v2749_v19 = vmul.f32 %v1013_v56, %v748_v9  ;;  %v750_v20 = vpop.f32.mrb[21].mxu1  ;;  %1234 = vmatmul.mubr.bf16.vlgmr.msra.gmra.mrb[16].mxu0 %v1089_v50  ;;  %v1579_v56 = vmul.f32 -1.442695, %v2717_v49 }
 0x1b8   : > { %v1944_v7 = vpop.eup %1943  ;;  %1963 = vpow2.f32 %v1589_v3  ;;  %v2752_v10 = vmul.f32 %v1014_v2, %v750_v20  ;;  %v752_v22 = vpop.f32.mrb[22].mxu1 }
 0x1b9   : > { %v2754_v23 = vpop.eup %1945  ;;  %1965 = vrcp.f32 %v920_v16  ;;  %v921_v24 = vadd.f32 1.0, %v1944_v7  ;;  %v2756_v27 = vmul.f32 %v1015_v13, %v752_v22  ;;  %v754_v28 = vpop.f32.mrb[23].mxu1  ;;  %v1580_v13 = vmul.f32 -1.442695, %v2722_v54 }
 0x1ba   : > { %v1948_v14 = vpop.eup %1947  ;;  %1967 = vpow2.f32 %v1590_v6  ;;  %v1595_v6 = vmul.f32 -1.442695, %v2720_v53  ;;  %v1596_v7 = vmul.f32 -1.442695, %v2724_v57  ;;  %v1581_v22 = vmul.f32 -1.442695, %v2726_v60 }
 0x1bb   : > { %v2759_v33 = vpop.eup %1949  ;;  %1969 = vrcp.f32 %v921_v24  ;;  %v922_v35 = vadd.f32 1.0, %v1948_v14  ;;  %v1091_v36 = vpack.c.bf16 %v2756_v27, %v2749_v19 }
 0x1bc   : > { %v1952_v58 = vpop.eup %1951  ;;  %1971 = vpow2.f32 %v1591_v21 }
 0x1bd   : > { %v1954_v40 = vpop.eup %1953  ;;  %1973 = vrcp.f32 %v922_v35  ;;  %v923_v61 = vadd.f32 1.0, %v1952_v58 }
 0x1be   : > { %v1956_v41 = vpop.eup %1955  ;;  %1975 = vpow2.f32 %v1592_v30  ;;  %v758_v43 = vpop.f32.mrb[24].mxu1  ;;  %v935_v50 = vadd.f32 1.0, %v1954_v40  ;;  %v1597_v30 = vmul.f32 -1.442695, %v2729_v5 }
 0x1bf   : > { %v2765_v0 = vpop.eup %1957  ;;  %1977 = vrcp.f32 %v923_v61  ;;  %v924_v44 = vadd.f32 1.0, %v1956_v41  ;;  %v760_v47 = vpop.f32.mrb[25].mxu1 }
 0x1c0   : > { %v1960_v48 = vpop.eup %1959  ;;  %1979 = vpow2.f32 %v1593_v39  ;;  %v762_v51 = vpop.f32.mrb[26].mxu1 }
 0x1c1   : > { %v2767_v3 = vpop.eup %1961  ;;  %1981 = vrcp.f32 %v924_v44  ;;  %v925_v52 = vadd.f32 1.0, %v1960_v48  ;;  %v764_v63 = vpop.f32.mrb[27].mxu1 }
 0x1c2   : > { %v1964_v2 = vpop.eup %1963  ;;  %1983 = vpow2.f32 %v1594_v42 }
 0x1c3   : > { %v1966_v9 = vpop.eup %1965  ;;  %1985 = vrcp.f32 %v925_v52  ;;  %v936_v40 = vadd.f32 1.0, %v1964_v2 }
 0x1c4   : > { %v1968_v16 = vpop.eup %1967  ;;  %1987 = vrcp.f32 %v935_v50  ;;  %v1016_v20 = vmul.f32 %v1966_v9, %v2689_v17 }
 0x1c5   : > { %v1970_v21 = vpop.eup %1969  ;;  %1989 = vpow2.f32 %v1579_v56  ;;  %v937_v52 = vadd.f32 1.0, %v1968_v16  ;;  %v1025_v16 = vmul.f32 %v2741_v55, %v2654_v59 }
 0x1c6   : > { %v1972_v24 = vpop.eup %1971  ;;  %v1017_v14 = vmul.f32 %v1970_v21, %v2695_v25  ;;  %1991 = vpow2.f32 %v1595_v6  ;;  %v1048_v35 = vmul.f32 %v1016_v20, %v754_v28  ;;  %v768_v58 = vpop.f32.mrb[28].mxu1 }
 0x1c7   : > { %v1974_v39 = vpop.eup %1973  ;;  %1993 = vpow2.f32 %v1580_v13  ;;  %v2777_v61 = vpop.f32.mrb[29].mxu1 }
 0x1c8   : > { %v1976_v17 = vpop.eup %1975  ;;  %v1018_v41 = vmul.f32 %v1974_v39, %v2700_v29  ;;  %1995 = vpow2.f32 %v1596_v7  ;;  %v1092_v42 = vpack.c.bf16 %v1048_v35, %v2752_v10  ;;  %v1049_v44 = vmul.f32 %v1017_v14, %v758_v43  ;;  %v2781_v48 = vpop.f32.mrb[30].mxu1 }
 0x1c9   : > { %v1978_v25 = vpop.eup %1977  ;;  %1997 = vpow2.f32 %v1581_v22  ;;  %v2783_v50 = vpop.f32.mrb[31].mxu1  ;;  %v938_v29 = vadd.f32 1.0, %v1972_v24  ;;  %v939_v20 = vadd.f32 1.0, %v1976_v17 }
 0x1ca   : > { %v1980_v28 = vpop.eup %1979  ;;  %v1019_v56 = vmul.f32 %v1978_v25, %v2704_v32  ;;  %1999 = vpow2.f32 %v1597_v30  ;;  %1241 = vmatprep.mubr.bf16.mxu0 %v1092_v42  ;;  %v1050_v2 = vmul.f32 %v1018_v41, %v760_v47  ;;  %v1026_v32 = vmul.f32 %v2746_v12, %v2659_v62 }
 0x1cb   : > { %v1982_v6 = vpop.eup %1981  ;;  %2001 = vrcp.f32 %v936_v40  ;;  %1242 = vmatmul.mubr.bf16.gmra.mrb[20].mxu0 %v1091_v36  ;;  %v1027_v47 = vmul.f32 %v2754_v23, %v2664_v1  ;;  %v940_v59 = vadd.f32 1.0, %v1980_v28  ;;  %v1029_v25 = vmul.f32 %v2765_v0, %v2675_v8 }
 0x1cc   : > { %v1984_v10 = vpop.eup %1983  ;;  %v1020_v43 = vmul.f32 %v1982_v6, %v2709_v37  ;;  %v1051_v9 = vmul.f32 %v1019_v56, %v762_v51  ;;  %2003 = vrcp.f32 %v937_v52  ;;  %v1028_v51 = vmul.f32 %v2759_v33, %v2669_v4 }
 0x1cd   : > { %v1986_v13 = vpop.eup %1985  ;;  %2005 = vrcp.f32 %v938_v29  ;;  %v941_v17 = vadd.f32 1.0, %v1984_v10  ;;  %v1030_v52 = vmul.f32 %v2767_v3, %v2680_v11 }
 0x1ce   : > { %v1988_v7 = vpop.eup %1987  ;;  %v1021_v19 = vmul.f32 %v1986_v13, %v2713_v45  ;;  %v1093_v27 = vpack.c.bf16 %v1051_v9, %v1049_v44  ;;  %v1052_v36 = vmul.f32 %v1020_v43, %v764_v63  ;;  %v778_v21 = vpop.f32.mrb[32].mxu1  ;;  %2007 = vrcp.f32 %v939_v20 }
 0x1cf   : > { %v1990_v37 = vpop.eup %1989  ;;  %v2799_v55 = vmul.f32 %v1025_v16, %v778_v21  ;;  %v780_v62 = vpop.f32.mrb[33].mxu1  ;;  %v1031_v6 = vmul.f32 %v1988_v7, %v2686_v15 }
 0x1d0   : > { %v1992_v12 = vpop.eup %1991  ;;  %v926_v22 = vadd.f32 1.0, %v1990_v37  ;;  %v1094_v1 = vpack.c.bf16 %v1052_v36, %v1050_v2  ;;  %v2801_v23 = vmul.f32 %v1021_v19, %v768_v58  ;;  %v2803_v24 = vmul.f32 %v1026_v32, %v780_v62  ;;  %v782_v45 = vpop.f32.mrb[34].mxu1 }
 0x1d1   : > { %v1994_v14 = vpop.eup %1993  ;;  %v2805_v63 = vmul.f32 %v1027_v47, %v782_v45  ;;  %v784_v30 = vpop.f32.mrb[35].mxu1  ;;  %v942_v28 = vadd.f32 1.0, %v1992_v12 }
 0x1d2   : > { %v1996_v35 = vpop.eup %1995  ;;  %2009 = vrcp.f32 %v926_v22  ;;  %v927_v4 = vadd.f32 1.0, %v1994_v14  ;;  %1249 = vmatprep.mubr.bf16.mxu0 %v1094_v1  ;;  %v2807_v33 = vmul.f32 %v1028_v51, %v784_v30 }
 0x1d3   : > { %v1998_v39 = vpop.eup %1997  ;;  %2011 = vrcp.f32 %v940_v59  ;;  %1250 = vmatmul.mubr.bf16.gmra.mrb[24].mxu0 %v1093_v27  ;;  %v1097_v58 = vpack.c.bf16 %v2805_v63, %v2799_v55  ;;  %v943_v56 = vadd.f32 1.0, %v1996_v35  ;;  %v1075_v63 = vld [vmem:[#allocation2 + $0x10] sm:$0xff] }
 0x1d4   : > { %v2000_v40 = vpop.eup %1999  ;;  %2013 = vrcp.f32 %v927_v4  ;;  %v928_v41 = vadd.f32 1.0, %v1998_v39  ;;  %v1098_v42 = vpack.c.bf16 %v2807_v33, %v2803_v24 }
 0x1d5   : > { %v2002_v44 = vpop.eup %2001  ;;  %v944_v29 = vadd.f32 1.0, %v2000_v40 }
 0x1d6   : > { %2015 = vrcp.f32 %v928_v41  ;;  %v788_v2 = vpop.f32.mrb[36].mxu1  ;;  %v2004_v9 = vpop.eup %2003  ;;  %v1032_v13 = vmul.f32 %v2002_v44, %v2691_v18 }
 0x1d7   : > { %v2818_v10 = vmul.f32 %v1029_v25, %v788_v2  ;;  %v790_v43 = vpop.f32.mrb[37].mxu1  ;;  %2017 = vrcp.f32 %v941_v17  ;;  %v2006_v8 = vpop.eup %2005  ;;  %v1033_v27 = vmul.f32 %v2004_v9, %v2697_v26 }
 0x1d8   : > { %v1062_v16 = vmul.f32 %v1030_v52, %v790_v43  ;;  %v792_v32 = vpop.f32.mrb[38].mxu1  ;;  %2019 = vrcp.f32 %v942_v28  ;;  %v2008_v3 = vpop.eup %2007  ;;  %v1034_v21 = vmul.f32 %v2006_v8, %v2702_v31 }
 0x1d9   : > { %v1063_v0 = vmul.f32 %v1031_v6, %v792_v32  ;;  %v794_v47 = vpop.f32.mrb[39].mxu1  ;;  %2021 = vrcp.f32 %v943_v56  ;;  %v1035_v51 = vmul.f32 %v2008_v3, %v2706_v34 }
 0x1da   : > { %v1064_v11 = vmul.f32 %v1032_v13, %v794_v47  ;;  %2023 = vrcp.f32 %v944_v29  ;;  %v1076_v47 = vld [vmem:[#allocation2 + $0x18] sm:$0xff] }
 0x1db   : > { %v1099_v15 = vpack.c.bf16 %v1063_v0, %v2818_v10 }
 0x1dc   : > { %v2010_v20 = vpop.eup %2009  ;;  %v1100_v7 = vpack.c.bf16 %v1064_v11, %v1062_v16 }
 0x1dd   : > { %v2012_v19 = vpop.eup %2011  ;;  %v1022_v18 = vmul.f32 %v2010_v20, %v2717_v49 }
 0x1de   : > { %v2014_v36 = vpop.eup %2013  ;;  %v798_v37 = vpop.f32.mrb[40].mxu1  ;;  %v1036_v45 = vmul.f32 %v2012_v19, %v2711_v38  ;;  %v1077_v19 = vld [vmem:[#allocation2 + $0x20] sm:$0xff] }
 0x1df   : > { %v1023_v59 = vmul.f32 %v2014_v36, %v2722_v54  ;;  %v1054_v62 = vmul.f32 %v1022_v18, %v2777_v61  ;;  %v1065_v12 = vmul.f32 %v1033_v27, %v798_v37  ;;  %v800_v22 = vpop.f32.mrb[41].mxu1 }
 0x1e0   : > { %v2016_v1 = vpop.eup %2015  ;;  %v1066_v14 = vmul.f32 %v1034_v21, %v800_v22  ;;  %v802_v30 = vpop.f32.mrb[42].mxu1  ;;  %v1078_v21 = vld [vmem:[#allocation2 + $0x28] sm:$0xff]  ;;  %v1079_v22 = vld [vmem:[#allocation2 + $0x30] sm:$0xff] }
 0x1e1   : > { %v1024_v26 = vmul.f32 %v2016_v1, %v2726_v60  ;;  %v1055_v49 = vmul.f32 %v1023_v59, %v2781_v48  ;;  %v1067_v35 = vmul.f32 %v1035_v51, %v802_v30  ;;  %v804_v31 = vpop.f32.mrb[43].mxu1  ;;  %v2018_v4 = vpop.eup %2017  ;;  %v1080_v30 = vld [vmem:[#allocation2 + $0x38] sm:$0xff] }
 0x1e2   : > { %v1068_v39 = vmul.f32 %v1036_v45, %v804_v31  ;;  %v2020_v34 = vpop.eup %2019  ;;  %v1037_v38 = vmul.f32 %v2018_v4, %v2715_v46 }
 0x1e3   : > { %v1095_v54 = vpack.c.bf16 %v1055_v49, %v2801_v23  ;;  %v1056_v61 = vmul.f32 %v1024_v26, %v2783_v50  ;;  %v1101_v40 = vpack.c.bf16 %v1067_v35, %v1065_v12  ;;  %v2022_v17 = vpop.eup %2021  ;;  %v1038_v60 = vmul.f32 %v2020_v34, %v2720_v53 }
 0x1e4   : > { %v1102_v41 = vpack.c.bf16 %v1068_v39, %v1066_v14  ;;  %v2024_v44 = vpop.eup %2023  ;;  %v1039_v48 = vmul.f32 %v2022_v17, %v2724_v57  ;;  %v1081_v39 = vld [vmem:[#allocation2 + $0x40] sm:$0xff] }
 0x1e5   : > { %v1096_v25 = vpack.c.bf16 %v1056_v61, %v1054_v62  ;;  %v1040_v2 = vmul.f32 %v2024_v44, %v2729_v5  ;;  %v1073_v5 = vld [vmem:[#allocation2] sm:$0xff] }
 0x1e6   : > { %v808_v28 = vpop.f32.mrb[44].mxu1 }
 0x1e7   : > { %1257 = vmatprep.mubr.bf16.mxu0 %v1096_v25  ;;  %v1069_v52 = vmul.f32 %v1037_v38, %v808_v28  ;;  %v810_v56 = vpop.f32.mrb[45].mxu1 }
 0x1e8   : > { %1258 = vmatmul.mubr.bf16.gmra.mrb[28].mxu0 %v1095_v54  ;;  %v1070_v23 = vmul.f32 %v1038_v60, %v810_v56  ;;  %v812_v50 = vpop.f32.mrb[46].mxu1  ;;  %v1083_v60 = vld [vmem:[#allocation2 + $0x50] sm:$0xff]  ;;  %v1084_v56 = vld [vmem:[#allocation2 + $0x58] sm:$0xff] }
 0x1e9   : > { %1265 = vmatprep.mubr.bf16.mxu0 %v1098_v42  ;;  %v1071_v6 = vmul.f32 %v1039_v48, %v812_v50  ;;  %v814_v46 = vpop.f32.mrb[47].mxu1  ;;  %v1074_v42 = vld [vmem:[#allocation2 + $0x8] sm:$0xff] }
 0x1ea   : > { %v1072_v29 = vmul.f32 %v1040_v2, %v814_v46 }
 0x1eb   : > { %v1103_v10 = vpack.c.bf16 %v1071_v6, %v1069_v52 }
 0x1ec   : > { %v1104_v53 = vpack.c.bf16 %v1072_v29, %v1070_v23  ;;  %v1085_v29 = vld [vmem:[#allocation2 + $0x60] sm:$0xff] }
 0x1f0   : > { %1266 = vmatmul.mubr.bf16.gmra.mrb[32].mxu0 %v1097_v58 }
 0x1f1   : > { %1273 = vmatprep.mubr.bf16.mxu0 %v1100_v7 }
 0x1f8   : > { %1274 = vmatmul.mubr.bf16.gmra.mrb[36].mxu0 %v1099_v15 }
 0x1f9   : > { %1281 = vmatprep.mubr.bf16.mxu0 %v1102_v41 }
 0x200   : > { %1282 = vmatmul.mubr.bf16.gmra.mrb[40].mxu0 %v1101_v40  ;;  %v1082_v40 = vld [vmem:[#allocation2 + $0x48] sm:$0xff] }
 0x201   : > { %1289 = vmatprep.mubr.bf16.mxu0 %v1104_v53 }
 0x208   : > { %1290 = vmatmul.mubr.bf16.gmra.mrb[44].mxu0 %v1103_v10 }
 0x28a   : > { %v1640_v57 = vpop.f32.mrb[16].mxu0 }
 0x28b   : > { %v1641_v43 = vpop.f32.mrb[17].mxu0 }
 0x28c   : > { %v1642_v24 = vadd.f32 %v1641_v43, %v1640_v57  ;;  %v1643_v33 = vpop.f32.mrb[18].mxu0 }
 0x28d   : > { %v1644_v9 = vpop.f32.mrb[19].mxu0 }
 0x28e   : > { %v1298_v13 = vadd.f32 %v1642_v24, %v1073_v5  ;;  %v1645_v16 = vadd.f32 %v1644_v9, %v1643_v33  ;;  %v1086_v5 = vld [vmem:[#allocation2 + $0x68] sm:$0xff] }
 0x290   : > { %1314 = vst [vmem:[#allocation2] sm:$0xff] %v1298_v13  ;;  %v1299_v32 = vadd.f32 %v1645_v16, %v1074_v42  ;;  %v1087_v13 = vld [vmem:[#allocation2 + $0x70] sm:$0xff] }
 0x292   : > { %1315 = vst [vmem:[#allocation2 + $0x8] sm:$0xff] %v1299_v32 }
 0x29e   : > { %v1646_v55 = vpop.f32.mrb[20].mxu0 }
 0x29f   : > { %v1647_v58 = vpop.f32.mrb[21].mxu0 }
 0x2a0   : > { %v1648_v8 = vadd.f32 %v1647_v58, %v1646_v55  ;;  %v1649_v0 = vpop.f32.mrb[22].mxu0 }
 0x2a1   : > { %v1650_v11 = vpop.f32.mrb[23].mxu0 }
 0x2a2   : > { %v1300_v3 = vadd.f32 %v1648_v8, %v1075_v63  ;;  %v1651_v15 = vadd.f32 %v1650_v11, %v1649_v0  ;;  %v1088_v63 = vld [vmem:[#allocation2 + $0x78] sm:$0xff]  ;;  %v1334_v11 = vld [vmem:[#allocation2] sm:$0xff] (!%p1614_p12) }
 0x2a3   : > { %1350 = vst [vmem:[%s2573_s24] sm:$0xff] (!%p1614_p12), %v1334_v11 }
 0x2a4   : > { %1316 = vst [vmem:[#allocation2 + $0x10] sm:$0xff] %v1300_v3  ;;  %v1301_v20 = vadd.f32 %v1651_v15, %v1076_v47  ;;  %v1335_v3 = vld [vmem:[#allocation2 + $0x8] sm:$0xff] (!%p1614_p12) }
 0x2a5   : > { %1351 = vst [vmem:[%s2573_s24 + $0x8] sm:$0xff] (!%p1614_p12), %v1335_v3 }
 0x2a6   : > { %1317 = vst [vmem:[#allocation2 + $0x18] sm:$0xff] %v1301_v20  ;;  %v1652_v7 = vpop.f32.mrb[24].mxu0 }
 0x2a7   : > { %v1653_v27 = vpop.f32.mrb[25].mxu0 }
 0x2a8   : > { %v1654_v18 = vadd.f32 %v1653_v27, %v1652_v7  ;;  %v1655_v36 = vpop.f32.mrb[26].mxu0 }
 0x2a9   : > { %v1656_v37 = vpop.f32.mrb[27].mxu0 }
 0x2aa   : > { %v1302_v51 = vadd.f32 %v1654_v18, %v1077_v19  ;;  %v1657_v59 = vadd.f32 %v1656_v37, %v1655_v36 }
 0x2ab   : > { %v1336_v15 = vld [vmem:[#allocation2 + $0x10] sm:$0xff] (!%p1614_p12) }
 0x2ac   : > { %1318 = vst [vmem:[#allocation2 + $0x20] sm:$0xff] %v1302_v51  ;;  %v1303_v62 = vadd.f32 %v1657_v59, %v1078_v21  ;;  %1352 = vst [vmem:[%s2573_s24 + $0x10] sm:$0xff] (!%p1614_p12), %v1336_v15 }
 0x2ad   : > { %v1337_v20 = vld [vmem:[#allocation2 + $0x18] sm:$0xff] (!%p1614_p12) }
 0x2ae   : > { %1319 = vst [vmem:[#allocation2 + $0x28] sm:$0xff] %v1303_v62  ;;  %1353 = vst [vmem:[%s2573_s24 + $0x18] sm:$0xff] (!%p1614_p12), %v1337_v20 }
 0x2b3   : > { %v1338_v7 = vld [vmem:[#allocation2 + $0x20] sm:$0xff] (!%p1614_p12) }
 0x2b4   : > { %1354 = vst [vmem:[%s2573_s24 + $0x20] sm:$0xff] (!%p1614_p12), %v1338_v7 }
 0x2b5   : > { %v1339_v19 = vld [vmem:[#allocation2 + $0x28] sm:$0xff] (!%p1614_p12) }
 0x2b6   : > { %1355 = vst [vmem:[%s2573_s24 + $0x28] sm:$0xff] (!%p1614_p12), %v1339_v19 }
 0x2bb   : > { %v1658_v12 = vpop.f32.mrb[28].mxu0 }
 0x2bc   : > { %v1659_v1 = vpop.f32.mrb[29].mxu0 }
 0x2bd   : > { %v1660_v45 = vadd.f32 %v1659_v1, %v1658_v12  ;;  %v1661_v14 = vpop.f32.mrb[30].mxu0 }
 0x2be   : > { %v1662_v26 = vpop.f32.mrb[31].mxu0 }
 0x2bf   : > { %v1304_v49 = vadd.f32 %v1660_v45, %v1079_v22  ;;  %v1663_v35 = vadd.f32 %v1662_v26, %v1661_v14 }
 0x2c1   : > { %1320 = vst [vmem:[#allocation2 + $0x30] sm:$0xff] %v1304_v49  ;;  %v1305_v31 = vadd.f32 %v1663_v35, %v1080_v30 }
 0x2c3   : > { %1321 = vst [vmem:[#allocation2 + $0x38] sm:$0xff] %v1305_v31  ;;  %v1664_v4 = vpop.f32.mrb[32].mxu0 }
 0x2c4   : > { %v1665_v34 = vpop.f32.mrb[33].mxu0 }
 0x2c5   : > { %v1666_v54 = vadd.f32 %v1665_v34, %v1664_v4  ;;  %v1667_v61 = vpop.f32.mrb[34].mxu0 }
 0x2c6   : > { %v1668_v17 = vpop.f32.mrb[35].mxu0 }
 0x2c7   : > { %v1306_v41 = vadd.f32 %v1666_v54, %v1081_v39  ;;  %v1669_v44 = vadd.f32 %v1668_v17, %v1667_v61 }
 0x2c8   : > { %v1340_v27 = vld [vmem:[#allocation2 + $0x30] sm:$0xff] (!%p1614_p12) }
 0x2c9   : > { %1322 = vst [vmem:[#allocation2 + $0x40] sm:$0xff] %v1306_v41  ;;  %v1307_v38 = vadd.f32 %v1669_v44, %v1082_v40  ;;  %1356 = vst [vmem:[%s2573_s24 + $0x30] sm:$0xff] (!%p1614_p12), %v1340_v27 }
 0x2ca   : > { %v1341_v18 = vld [vmem:[#allocation2 + $0x38] sm:$0xff] (!%p1614_p12) }
 0x2cb   : > { %1323 = vst [vmem:[#allocation2 + $0x48] sm:$0xff] %v1307_v38  ;;  %v1670_v25 = vpop.f32.mrb[36].mxu0  ;;  %1357 = vst [vmem:[%s2573_s24 + $0x38] sm:$0xff] (!%p1614_p12), %v1341_v18 }
 0x2cc   : > { %v1671_v28 = vpop.f32.mrb[37].mxu0 }
 0x2cd   : > { %v1672_v48 = vadd.f32 %v1671_v28, %v1670_v25  ;;  %v1673_v52 = vpop.f32.mrb[38].mxu0 }
 0x2ce   : > { %v1674_v2 = vpop.f32.mrb[39].mxu0 }
 0x2cf   : > { %v1308_v23 = vadd.f32 %v1672_v48, %v1083_v60  ;;  %v1675_v50 = vadd.f32 %v1674_v2, %v1673_v52 }
 0x2d0   : > { %v1342_v36 = vld [vmem:[#allocation2 + $0x40] sm:$0xff] (!%p1614_p12) }
 0x2d1   : > { %1324 = vst [vmem:[#allocation2 + $0x50] sm:$0xff] %v1308_v23  ;;  %v1309_v6 = vadd.f32 %v1675_v50, %v1084_v56  ;;  %1358 = vst [vmem:[%s2573_s24 + $0x40] sm:$0xff] (!%p1614_p12), %v1342_v36 }
 0x2d2   : > { %v1343_v21 = vld [vmem:[#allocation2 + $0x48] sm:$0xff] (!%p1614_p12) }
 0x2d3   : > { %1325 = vst [vmem:[#allocation2 + $0x58] sm:$0xff] %v1309_v6  ;;  %v1676_v46 = vpop.f32.mrb[40].mxu0  ;;  %1359 = vst [vmem:[%s2573_s24 + $0x48] sm:$0xff] (!%p1614_p12), %v1343_v21 }
 0x2d4   : > { %v1677_v10 = vpop.f32.mrb[41].mxu0 }
 0x2d5   : > { %v1678_v53 = vadd.f32 %v1677_v10, %v1676_v46  ;;  %v1679_v57 = vpop.f32.mrb[42].mxu0 }
 0x2d6   : > { %v1680_v43 = vpop.f32.mrb[43].mxu0 }
 0x2d7   : > { %v1310_v24 = vadd.f32 %v1678_v53, %v1085_v29  ;;  %v1681_v33 = vadd.f32 %v1680_v43, %v1679_v57 }
 0x2d8   : > { %v1344_v37 = vld [vmem:[#allocation2 + $0x50] sm:$0xff] (!%p1614_p12) }
 0x2d9   : > { %1326 = vst [vmem:[#allocation2 + $0x60] sm:$0xff] %v1310_v24  ;;  %v1311_v42 = vadd.f32 %v1681_v33, %v1086_v5  ;;  %1360 = vst [vmem:[%s2573_s24 + $0x50] sm:$0xff] (!%p1614_p12), %v1344_v37 }
 0x2da   : > { %v1345_v51 = vld [vmem:[#allocation2 + $0x58] sm:$0xff] (!%p1614_p12) }
 0x2db   : > { %1327 = vst [vmem:[#allocation2 + $0x68] sm:$0xff] %v1311_v42  ;;  %v1682_v9 = vpop.f32.mrb[44].mxu0  ;;  %1361 = vst [vmem:[%s2573_s24 + $0x58] sm:$0xff] (!%p1614_p12), %v1345_v51 }
 0x2dc   : > { %v1683_v16 = vpop.f32.mrb[45].mxu0 }
 0x2dd   : > { %v1684_v32 = vadd.f32 %v1683_v16, %v1682_v9  ;;  %v1685_v55 = vpop.f32.mrb[46].mxu0  ;;  %1333 = sbr.rel (%p1614_p12) target bundleno = 748 (0x2ec), region = 52 }
 0x2de   : > { %v1686_v58 = vpop.f32.mrb[47].mxu0 }
 0x2df   : > { %v1312_v8 = vadd.f32 %v1684_v32, %v1087_v13  ;;  %v1687_v0 = vadd.f32 %v1686_v58, %v1685_v55 }
 0x2e0   : > { %v1346_v59 = vld [vmem:[#allocation2 + $0x60] sm:$0xff] (!%p1614_p12) }
 0x2e1   : > { %1328 = vst [vmem:[#allocation2 + $0x70] sm:$0xff] %v1312_v8  ;;  %v1313_v47 = vadd.f32 %v1687_v0, %v1088_v63  ;;  %1362 = vst [vmem:[%s2573_s24 + $0x60] sm:$0xff] (!%p1614_p12), %v1346_v59 }
 0x2e2   : > { %v1347_v62 = vld [vmem:[#allocation2 + $0x68] sm:$0xff] (!%p1614_p12) }
 0x2e3   : > { %1329 = vst [vmem:[#allocation2 + $0x78] sm:$0xff] %v1313_v47  ;;  %1363 = vst [vmem:[%s2573_s24 + $0x68] sm:$0xff] (!%p1614_p12), %v1347_v62 }
 0x2e8   : > { %v1348_v12 = vld [vmem:[#allocation2 + $0x70] sm:$0xff] }
 0x2e9   : > { %1364 = vst [vmem:[%s2573_s24 + $0x70] sm:$0xff] %v1348_v12 }
 0x2ea   : > { %v1349_v22 = vld [vmem:[#allocation2 + $0x78] sm:$0xff] }
 0x2eb   : > { %1365 = vst [vmem:[%s2573_s24 + $0x78] sm:$0xff] %v1349_v22 }
 0x2ec PF: > { %s1623_s18 = sshll.u32 %s2229_s19, 11  ;;  %s2976_s12 = sld [smem:[#allocation21_spill]] }
 0x2ed   : > { %s1380_s21 = sshll.u32 %s2573_s24, 4  ;;  %s1367_s5 = scalar_lea.sflag [#allocation5], %s2552_s0  ;;  %s2867_s21 = int_to_ptr.vmem [resolvable:$true] %s1380_s21 }
 0x2ee   : > { %s2115_s26 = scalar_lea.vmem %s2867_s21, 2048  ;;  %p2978_p11 = scmp.ne.s32.totalorder %s2964_s4, 0 }
 0x2ef   : > { %p2116_p13 = scmp.ne.s32.totalorder %s2867_s21, %s2115_s26  ;;  %s2253_s8 = smov [#allocation9]  }
 0x2f0   : > { %s2119_s25 = sshll.u32 %s2253_s8, 4  ;;  %s2120_s25 = int_to_ptr.vmem [resolvable:$false] %s2119_s25 }
 0x2f1   : > { %p2117_p6 = pnand %p2116_p13, %p2978_p11  ;;  %s2121_s19 = scalar_lea.vmem %s2120_s25, 4096 }
 0x2f2   : > { %s2977_s3 = smov %s2976_s12  ;;  %s2864_s30 = scalar_lea.hbm %s2976_s12, %s1623_s18 }
 0x2f3   : > { %p2118_p10 = pneg %p2117_p6  ;;  %p2122_p5 = scmp.lt.s32.totalorder %s2867_s21, %s2120_s25 }
 0x2f4   : > { %p2123_p1 = scmp.lt.s32.totalorder %s2121_s19, %s2115_s26 }
 0x2f6   : > { %p2124_p0 = por %p2123_p1, %p2122_p5 }
 0x2f8   : > { %p2125_p9 = pnand %p2124_p0, %p2118_p10 }
 0x2fa   : > { %2128 = shalt.err (!%p2125_p9)
}
 0x2fb   : > { %s2129_s10 = scalar_lea.hbm %s2864_s30, 2048  ;;  %s2133_s29 = scalar_lea.hbm %s2977_s3, 4096 }
 0x2fc   : > { %p2130_p2 = scmp.ne.s32.totalorder %s2864_s30, %s2129_s10  ;;  %p2134_p7 = scmp.lt.u32.totalorder %s2864_s30, %s2977_s3 }
 0x2fd   : > { %p2135_p8 = scmp.lt.u32.totalorder %s2133_s29, %s2129_s10  ;;  %p2137_p13 = scmp.lt.u32.totalorder %s2129_s10, %s2864_s30 }
 0x2fe   : > { %p2131_p3 = pnand %p2130_p2, %p2978_p11 }
 0x2ff   : > { %p2136_p12 = por %p2135_p8, %p2134_p7 }
 0x300   : > { %p2132_p4 = pneg %p2131_p3 }
 0x301   : > { %p2138_p6 = por %p2137_p13, %p2136_p12 }
 0x303   : > { %p2139_p10 = pnand %p2138_p6, %p2132_p4 }
 0x305   : > { %2142 = shalt.err (!%p2139_p10)
}
 0x306   : > { %s2254_s17 = smov 128   ;;  %s2255_s28 = smov 8  }
 0x307   : > { %1710 = dma.vmem_to_hbm [thread:$0]  (%p2978_p11), %s2867_s21, 2048, %s2864_s30, %s1367_s5, %s2254_s17, %s2254_s17, %s2255_s28  }
 0x308 PF: > { %p1727_p5 = scmp.ge.s32.totalorder %s2241_s22, 2  ;;  %s1395_s24 = sand.u32 1, %s2213_s15  }
 0x309   : > { %p2979_p1 = scmp.ne.s32.totalorder %s2966_s23, 0  ;;  %s1396_s18 = scalar_lea.sflag [#allocation5], %s1395_s24 }
 0x30b   : > { %p1723_p0 = pnand %p1727_p5, %p2979_p1 }
 0x30d   : > { %2196 = dma.done.wait (!%p1723_p0), %s1396_s18, 2048  }
 0x30e   : > { %2198 = vsyncadd (!%p1723_p0), %s1396_s18, 4294965248  ;;  %s22_s22 = sadd.s32 1, %s2241_s22   ;;  %s2980_s27 = sld [smem:[#allocation16_spill]] }
 0x30f   : > { %p19_p9 = scmp.ge.s32.totalorder %s22_s22, 6   ;;  %s2981_s4 = sld [smem:[#allocation13_spill]] }
 0x310   : > { %s2982_s17 = sld [smem:[#allocation18_spill]]  ;;  %s2983_s19 = sld [smem:[#allocation14_spill]] }
 0x311   : > { %s2984_s0 = sld [smem:[#allocation15_spill]]  ;;  %s2985_s21 = sld [smem:[#allocation17_spill]] }
 0x312   : > { %s2986_s12 = smov %s2205_s13  ;;  %s2987_s13 = smov %s2209_s14 }
 0x313   : > { %s2989_s15 = smov %s2217_s16  ;;  %s2991_s18 = smov %s2233_s20 }
 0x314   : > { %s2988_s14 = smov %s2980_s27  ;;  %21 = sbr.rel (!%p19_p9) target bundleno = 15 (0xf), region = 109 }
 0x315   : > { %s2990_s16 = smov %s2981_s4 }
 0x317   : > { %s2992_s20 = smov %s2984_s0 }
 0x31b   :  { %1401 = vsyncpa [#allocation4], 1 }
 0x31c   :  { %1403 = vsyncpa [#allocation4 + $0x1], 1 }
 0x31d   :  { %1404 = vsyncpa [#allocation7], 1 }
 0x31e   :  { %1406 = vsyncpa [#allocation7 + $0x1], 1 }
 0x31f   :  { %1407 = vsyncpa [#allocation5], 1 }
 0x320   :  { %1409 = vsyncpa [#allocation5 + $0x1], 1 }

</bundles_post_ra>
